<compile_context>
chip_gen: v7x
topology: tpu7x:2x2x1
jax: 0.10.0
libtpu: 0.0.40
codegen_flags: <defaults>
</compile_context>

<pallas_src>
import math

import jax
import jax.numpy as jnp
from jax.experimental import pallas as pl
from jax.experimental.pallas import tpu as pltpu

# Older JAX releases named this TPUCompilerParams.
_CompilerParams = getattr(pltpu, "CompilerParams", None) or getattr(
    pltpu, "TPUCompilerParams")


def _round_up(x, m):
    return (x + m - 1) // m * m


def _fused_gru_kernel(x_ref, wih_ref, whh_ref, bih_ref, bhn_ref, h0_ref,
                      out_ref, h_ref):
    """One T-chunk of the fused grouped GRU.

    x_ref   : (Tc*B, C)     flattened time-major input rows for this chunk
    wih_ref : (C, 3*GHp)    block-diag input weights, gate-major, lane-padded
    whh_ref : (GHp, 3*GHp)  block-diag hidden weights, gate-major, lane-padded
    bih_ref : (1, 3*GHp)    b_ih (+ b_hh folded in for r,z gates), lane-padded
    bhn_ref : (1, GHp)      b_hh of the n gate (stays inside the r*(...) term)
    h0_ref  : (B, GHp)      initial hidden state (group-major, lane-padded)
    out_ref : (Tc, B, GHp)  per-timestep hidden states for this chunk
    h_ref   : (B, GHp) f32  VMEM scratch carrying h across T-chunks
    """
    Tc, B, GHp = out_ref.shape

    @pl.when(pl.program_id(0) == 0)
    def _():
        h_ref[...] = h0_ref[...].astype(jnp.float32)

    wih = wih_ref[...]
    whh = whh_ref[...]
    bih = bih_ref[...]
    bhn = bhn_ref[...]

    # Whole-chunk input projection: ONE 2-D MXU pass, (Tc*B, C) x (C, 3*GHp).
    gi = jnp.dot(x_ref[...], wih, preferred_element_type=jnp.float32) + bih

    h = h_ref[...]
    for t in range(Tc):                       # Tc is static -> fully unrolled
        gi_t = gi[t * B:(t + 1) * B, :]                               # (B, 3*GHp)
        gh = jnp.dot(h, whh, preferred_element_type=jnp.float32)      # (B, 3*GHp)
        # GHp is a multiple of 128, so every gate slice is vreg-lane aligned.
        r = jax.nn.sigmoid(gi_t[:, :GHp] + gh[:, :GHp])
        z = jax.nn.sigmoid(gi_t[:, GHp:2 * GHp] + gh[:, GHp:2 * GHp])
        n = jnp.tanh(gi_t[:, 2 * GHp:] + r * (gh[:, 2 * GHp:] + bhn))
        h = (1.0 - z) * n + z * h
        out_ref[t] = h.astype(out_ref.dtype)   # per-step lane-dense store
    h_ref[...] = h                             # carry to the next T-chunk


def _block_diag(w):
    """w: (G, R, C) -> block-diagonal (G*R, G*C)."""
    G, R, C = w.shape
    eye = jnp.eye(G, dtype=w.dtype)
    return jnp.einsum('grc,gk->grkc', w, eye).reshape(G * R, G * C)


def grouped_gru_forward(x, wih, whh, bih, bhh, h0=None, *, t_chunk=16):
    """x: (B, T, C); wih: (G, 3H, C//G); whh: (G, 3H, H); bih/bhh: (G, 3H).

    Returns (output, h_n) with output (B, T, G*H) and h_n (G, B, H), matching
    torch GroupedGRULayer.forward (batch_first=True, unidirectional, bias).
    """
    B, T, C = x.shape
    G, H3, IG = wih.shape
    H = H3 // 3
    GH = G * H
    assert C == G * IG
    GHp = _round_up(GH, 128)      # lane-pad each gate block to a full vreg width
    pad_g = GHp - GH

    if h0 is None:
        h0 = jnp.zeros((G, B, H), x.dtype)

    # ---- weight / bias fusion (all transposes hoisted out of the kernel) ----
    wih_t = jnp.transpose(wih, (0, 2, 1))   # (G, IG, 3H), cols = [r|z|n] per group
    whh_t = jnp.transpose(whh, (0, 2, 1))   # (G, H,  3H)

    def gate_w(wt, i):                      # block-diag weights for gate i
        return _block_diag(wt[:, :, i * H:(i + 1) * H])

    wih_bd = jnp.concatenate(
        [jnp.pad(gate_w(wih_t, i), ((0, 0), (0, pad_g))) for i in range(3)],
        axis=1)                                                     # (C, 3*GHp)
    whh_bd = jnp.concatenate(
        [jnp.pad(gate_w(whh_t, i), ((0, pad_g), (0, pad_g))) for i in range(3)],
        axis=1)                                                     # (GHp, 3*GHp)

    def gate_b(b, i):                       # group-major (GH,) bias for gate i
        return b[:, i * H:(i + 1) * H].reshape(-1)

    # Fold b_hh of the r/z gates into the input-side bias; only the n-gate
    # hidden bias must stay per-step (it sits inside the r*(...) term).
    bih_f = jnp.concatenate([
        jnp.pad(gate_b(bih, 0) + gate_b(bhh, 0), (0, pad_g)),
        jnp.pad(gate_b(bih, 1) + gate_b(bhh, 1), (0, pad_g)),
        jnp.pad(gate_b(bih, 2), (0, pad_g)),
    ]).reshape(1, 3 * GHp)
    bhn_f = jnp.pad(gate_b(bhh, 2), (0, pad_g)).reshape(1, GHp)

    h0_f = jnp.pad(jnp.transpose(h0, (1, 0, 2)).reshape(B, GH),
                   ((0, 0), (0, pad_g)))                            # (B, GHp)

    # ---- T-chunking ----------------------------------------------------------
    Tc = min(t_chunk, T)
    # Multi-chunk x blocks are (Tc*B, C); keep the sublane (row) dim 8-aligned.
    if Tc < T:
        sub = 8 // math.gcd(B, 8)
        Tc = min(_round_up(Tc, sub), T)
    n_chunks = -(-T // Tc)
    Tpad = n_chunks * Tc

    x_tbc = jnp.transpose(x, (1, 0, 2))                 # (T, B, C) time-major
    if Tpad != T:
        x_tbc = jnp.pad(x_tbc, ((0, Tpad - T), (0, 0), (0, 0)))
    x_flat = x_tbc.reshape(Tpad * B, C)                 # flattened for one 2-D dot

    itemsize = jnp.dtype(x.dtype).itemsize
    cost = pl.CostEstimate(
        flops=2 * Tpad * B * (C + GHp) * 3 * GHp,
        transcendentals=3 * Tpad * B * GHp,
        bytes_accessed=itemsize * (x_flat.size + Tpad * B * GHp + wih_bd.size
                                   + whh_bd.size + bih_f.size + bhn_f.size
                                   + h0_f.size),
    )

    out_tbh = pl.pallas_call(
        _fused_gru_kernel,
        out_shape=jax.ShapeDtypeStruct((Tpad, B, GHp), x.dtype),
        grid_spec=pltpu.PrefetchScalarGridSpec(
            num_scalar_prefetch=0,
            grid=(n_chunks,),
            in_specs=[
                pl.BlockSpec((Tc * B, C), lambda i: (i, 0)),       # x chunk (pipelined)
                pl.BlockSpec((C, 3 * GHp), lambda i: (0, 0)),      # resident weights
                pl.BlockSpec((GHp, 3 * GHp), lambda i: (0, 0)),    # resident weights
                pl.BlockSpec((1, 3 * GHp), lambda i: (0, 0)),      # resident bias
                pl.BlockSpec((1, GHp), lambda i: (0, 0)),          # resident bias
                pl.BlockSpec((B, GHp), lambda i: (0, 0)),          # resident h0
            ],
            out_specs=pl.BlockSpec((Tc, B, GHp), lambda i: (i, 0, 0)),
            scratch_shapes=[pltpu.VMEM((B, GHp), jnp.float32)],    # h carry
        ),
        compiler_params=_CompilerParams(
            dimension_semantics=("arbitrary",),     # serial h carry across chunks
            vmem_limit_bytes=32 * 1024 * 1024,
        ),
        cost_estimate=cost,
    )(x_flat, wih_bd, whh_bd, bih_f, bhn_f, h0_f)

    out_tbh = out_tbh[:T, :, :GH]                       # drop time & lane padding
    output = jnp.transpose(out_tbh, (1, 0, 2))          # (B, T, G*H)
    hn = jnp.transpose(out_tbh[T - 1].reshape(B, G, H), (1, 0, 2))  # (G, B, H)
    return output, hn


def _reference(x, wih, whh, bih, bhh):
    """Pure-JAX reimplementation of torch GroupedGRULayer (gate order r,z,n)."""
    B, T, C = x.shape
    G, H3, IG = wih.shape
    H = H3 // 3
    outs, hns = [], []
    for g in range(G):
        xg = x[..., g * IG:(g + 1) * IG]
        h = jnp.zeros((B, H), jnp.float32)
        wi, wh, bi, bh = wih[g], whh[g], bih[g], bhh[g]
        ys = []
        for t in range(T):
            gi = xg[:, t] @ wi.T + bi
            gh = h @ wh.T + bh
            r = jax.nn.sigmoid(gi[:, :H] + gh[:, :H])
            z = jax.nn.sigmoid(gi[:, H:2 * H] + gh[:, H:2 * H])
            n = jnp.tanh(gi[:, 2 * H:] + r * gh[:, 2 * H:])
            h = (1.0 - z) * n + z * h
            ys.append(h)
        outs.append(jnp.stack(ys, axis=1))
        hns.append(h)
    return jnp.concatenate(outs, axis=-1), jnp.stack(hns, axis=0)


if __name__ == "__main__":
    # Module config: input_size=16, hidden_size=32, groups=4, batch_first=True
    B, T = 2, 8
    input_size, hidden_size, groups = 16, 32, 4
    IG = input_size // groups          # 4
    H = hidden_size // groups          # 8

    key = jax.random.PRNGKey(0)
    kx, kwi, kwh, kbi, kbh = jax.random.split(key, 5)
    bound = 1.0 / jnp.sqrt(H)          # torch GRU default init range

    x = jax.random.normal(kx, (B, T, input_size), jnp.float32)
    wih = jax.random.uniform(kwi, (groups, 3 * H, IG), jnp.float32, -bound, bound)
    whh = jax.random.uniform(kwh, (groups, 3 * H, H), jnp.float32, -bound, bound)
    bih = jax.random.uniform(kbi, (groups, 3 * H), jnp.float32, -bound, bound)
    bhh = jax.random.uniform(kbh, (groups, 3 * H), jnp.float32, -bound, bound)

    ref_out, ref_hn = _reference(x, wih, whh, bih, bhh)

    # Single-chunk path (whole sequence in one grid step).
    out, hn = grouped_gru_forward(x, wih, whh, bih, bhh)
    jax.block_until_ready((out, hn))
    assert out.shape == (B, T, hidden_size) and hn.shape == (groups, B, H)
    assert jnp.allclose(out, ref_out, atol=1e-5, rtol=1e-5)
    assert jnp.allclose(hn, ref_hn, atol=1e-5, rtol=1e-5)

    # Multi-chunk path: exercises the VMEM h-carry across grid iterations.
    out2, hn2 = grouped_gru_forward(x, wih, whh, bih, bhh, t_chunk=4)
    jax.block_until_ready((out2, hn2))
    assert jnp.allclose(out2, ref_out, atol=1e-5, rtol=1e-5)
    assert jnp.allclose(hn2, ref_hn, atol=1e-5, rtol=1e-5)

    # Ragged-T path: exercises the trailing time padding.
    x3 = jax.random.normal(kx, (B, 10, input_size), jnp.float32)
    ref_out3, ref_hn3 = _reference(x3, wih, whh, bih, bhh)
    out3, hn3 = grouped_gru_forward(x3, wih, whh, bih, bhh, t_chunk=4)
    jax.block_until_ready((out3, hn3))
    assert jnp.allclose(out3, ref_out3, atol=1e-5, rtol=1e-5)
    assert jnp.allclose(hn3, ref_hn3, atol=1e-5, rtol=1e-5)

    print("KERNEL_OK")
</pallas_src>

<mosaic_0001>
module attributes {stable_mosaic.version = 11 : i64} {
  func.func @_fused_gru_kernel(%arg0: i32, %arg1: memref<16x16xf32, #tpu.memory_space<vmem>>, %arg2: memref<16x384xf32, #tpu.memory_space<vmem>>, %arg3: memref<128x384xf32, #tpu.memory_space<vmem>>, %arg4: memref<1x384xf32, #tpu.memory_space<vmem>>, %arg5: memref<1x128xf32, #tpu.memory_space<vmem>>, %arg6: memref<2x128xf32, #tpu.memory_space<vmem>>, %arg7: memref<8x2x128xf32, #tpu.memory_space<vmem>>, %arg8: memref<2x128xf32, #tpu.memory_space<vmem>>) attributes {dimension_semantics = [#tpu.dimension_semantics<arbitrary>], iteration_bounds = array<i64: 1>, scalar_prefetch = 0 : i64, scratch_operands = 1 : i64, tpu.core_type = #tpu.core_type<tc>, window_params = [{transform_indices = @transform_0, window_bounds = array<i64: 16, 16>}, {pipeline_mode = #tpu.pipeline_mode<synchronous>, transform_indices = @transform_1, window_bounds = array<i64: 16, 384>}, {pipeline_mode = #tpu.pipeline_mode<synchronous>, transform_indices = @transform_2, window_bounds = array<i64: 128, 384>}, {pipeline_mode = #tpu.pipeline_mode<synchronous>, transform_indices = @transform_3, window_bounds = array<i64: 1, 384>}, {pipeline_mode = #tpu.pipeline_mode<synchronous>, transform_indices = @transform_4, window_bounds = array<i64: 1, 128>}, {pipeline_mode = #tpu.pipeline_mode<synchronous>, transform_indices = @transform_5, window_bounds = array<i64: 2, 128>}, {transform_indices = @transform_6, window_bounds = array<i64: 8, 2, 128>}]} {
    %c0_i32 = arith.constant 0 : i32
    %0 = arith.cmpi eq, %arg0, %c0_i32 : i32
    %1 = arith.extui %0 : i1 to i32
    %c0_i32_0 = arith.constant 0 : i32
    %2 = arith.cmpi ne, %1, %c0_i32_0 : i32
    scf.if %2 {
      %c0_63 = arith.constant 0 : index
      %c0_64 = arith.constant 0 : index
      %277 = vector.load %arg6[%c0_63, %c0_64] : memref<2x128xf32, #tpu.memory_space<vmem>>, vector<2x128xf32>
      %c0_65 = arith.constant 0 : index
      %c0_66 = arith.constant 0 : index
      %278 = vector.load %arg8[%c0_65, %c0_66] : memref<2x128xf32, #tpu.memory_space<vmem>>, vector<2x128xf32>
      tpu.vector_store %arg8[%c0_65, %c0_66], %277 {strides = array<i32>} : memref<2x128xf32, #tpu.memory_space<vmem>>, vector<2x128xf32>,
    } else {
    }
    %c0 = arith.constant 0 : index
    %c0_1 = arith.constant 0 : index
    %3 = vector.load %arg2[%c0, %c0_1] : memref<16x384xf32, #tpu.memory_space<vmem>>, vector<16x384xf32>
    %c0_2 = arith.constant 0 : index
    %c0_3 = arith.constant 0 : index
    %4 = vector.load %arg3[%c0_2, %c0_3] : memref<128x384xf32, #tpu.memory_space<vmem>>, vector<128x384xf32>
    %c0_4 = arith.constant 0 : index
    %c0_5 = arith.constant 0 : index
    %5 = vector.load %arg4[%c0_4, %c0_5] : memref<1x384xf32, #tpu.memory_space<vmem>>, vector<1x384xf32>
    %c0_6 = arith.constant 0 : index
    %c0_7 = arith.constant 0 : index
    %6 = vector.load %arg5[%c0_6, %c0_7] : memref<1x128xf32, #tpu.memory_space<vmem>>, vector<1x128xf32>
    %c0_8 = arith.constant 0 : index
    %c0_9 = arith.constant 0 : index
    %7 = vector.load %arg1[%c0_8, %c0_9] : memref<16x16xf32, #tpu.memory_space<vmem>>, vector<16x16xf32>
    %cst = arith.constant dense<0.000000e+00> : vector<16x384xf32>
    %8 = tpu.matmul %7, %3, %cst {dimension_numbers = #tpu.dot_dimension_numbers<[1], [0], [0], [1], [0, 0, 1, 1], [], []>} : vector<16x16xf32>, vector<16x384xf32>, vector<16x384xf32> -> vector<16x384xf32>
    %9 = vector.broadcast %5 : vector<1x384xf32> to vector<16x384xf32>
    %10 = arith.addf %8, %9 : vector<16x384xf32>
    %c0_10 = arith.constant 0 : index
    %c0_11 = arith.constant 0 : index
    %11 = vector.load %arg8[%c0_10, %c0_11] : memref<2x128xf32, #tpu.memory_space<vmem>>, vector<2x128xf32>
    %12 = vector.extract_strided_slice %10 {offsets = [0, 0], sizes = [2, 384], strides = [1, 1]} : vector<16x384xf32> to vector<2x384xf32>
    %cst_12 = arith.constant dense<0.000000e+00> : vector<2x384xf32>
    %13 = tpu.matmul %11, %4, %cst_12 {dimension_numbers = #tpu.dot_dimension_numbers<[1], [0], [0], [1], [0, 0, 1, 1], [], []>} : vector<2x128xf32>, vector<128x384xf32>, vector<2x384xf32> -> vector<2x384xf32>
    %14 = vector.extract_strided_slice %12 {offsets = [0, 0], sizes = [2, 128], strides = [1, 1]} : vector<2x384xf32> to vector<2x128xf32>
    %15 = vector.extract_strided_slice %13 {offsets = [0, 0], sizes = [2, 128], strides = [1, 1]} : vector<2x384xf32> to vector<2x128xf32>
    %16 = arith.addf %14, %15 : vector<2x128xf32>
    %17 = arith.negf %16 : vector<2x128xf32>
    %18 = math.exp %17 : vector<2x128xf32>
    %cst_13 = arith.constant 1.000000e+00 : f32
    %19 = vector.broadcast %cst_13 : f32 to vector<2x128xf32>
    %20 = arith.addf %19, %18 : vector<2x128xf32>
    %21 = arith.divf %19, %20 : vector<2x128xf32>
    %22 = vector.extract_strided_slice %12 {offsets = [0, 128], sizes = [2, 128], strides = [1, 1]} : vector<2x384xf32> to vector<2x128xf32>
    %23 = vector.extract_strided_slice %13 {offsets = [0, 128], sizes = [2, 128], strides = [1, 1]} : vector<2x384xf32> to vector<2x128xf32>
    %24 = arith.addf %22, %23 : vector<2x128xf32>
    %25 = arith.negf %24 : vector<2x128xf32>
    %26 = math.exp %25 : vector<2x128xf32>
    %cst_14 = arith.constant 1.000000e+00 : f32
    %27 = vector.broadcast %cst_14 : f32 to vector<2x128xf32>
    %28 = arith.addf %27, %26 : vector<2x128xf32>
    %29 = arith.divf %27, %28 : vector<2x128xf32>
    %30 = vector.extract_strided_slice %12 {offsets = [0, 256], sizes = [2, 128], strides = [1, 1]} : vector<2x384xf32> to vector<2x128xf32>
    %31 = vector.extract_strided_slice %13 {offsets = [0, 256], sizes = [2, 128], strides = [1, 1]} : vector<2x384xf32> to vector<2x128xf32>
    %32 = vector.broadcast %6 : vector<1x128xf32> to vector<2x128xf32>
    %33 = arith.addf %31, %32 : vector<2x128xf32>
    %34 = arith.mulf %21, %33 : vector<2x128xf32>
    %35 = arith.addf %30, %34 : vector<2x128xf32>
    %36 = math.tanh %35 : vector<2x128xf32>
    %cst_15 = arith.constant 1.000000e+00 : f32
    %37 = vector.broadcast %cst_15 : f32 to vector<2x128xf32>
    %38 = arith.subf %37, %29 : vector<2x128xf32>
    %39 = arith.mulf %38, %36 : vector<2x128xf32>
    %40 = arith.mulf %29, %11 : vector<2x128xf32>
    %41 = arith.addf %39, %40 : vector<2x128xf32>
    %c0_16 = arith.constant 0 : index
    %c0_17 = arith.constant 0 : index
    %c0_18 = arith.constant 0 : index
    %42 = vector.load %arg7[%c0_16, %c0_17, %c0_18] : memref<8x2x128xf32, #tpu.memory_space<vmem>>, vector<1x2x128xf32>
    %43 = vector.shape_cast %42 : vector<1x2x128xf32> to vector<2x128xf32>
    %44 = vector.shape_cast %41 : vector<2x128xf32> to vector<1x2x128xf32>
    tpu.vector_store %arg7[%c0_16, %c0_17, %c0_18], %44 {strides = array<i32>} : memref<8x2x128xf32, #tpu.memory_space<vmem>>, vector<1x2x128xf32>,
    %45 = vector.extract_strided_slice %10 {offsets = [2, 0], sizes = [2, 384], strides = [1, 1]} : vector<16x384xf32> to vector<2x384xf32>
    %cst_19 = arith.constant dense<0.000000e+00> : vector<2x384xf32>
    %46 = tpu.matmul %41, %4, %cst_19 {dimension_numbers = #tpu.dot_dimension_numbers<[1], [0], [0], [1], [0, 0, 1, 1], [], []>} : vector<2x128xf32>, vector<128x384xf32>, vector<2x384xf32> -> vector<2x384xf32>
    %47 = vector.extract_strided_slice %45 {offsets = [0, 0], sizes = [2, 128], strides = [1, 1]} : vector<2x384xf32> to vector<2x128xf32>
    %48 = vector.extract_strided_slice %46 {offsets = [0, 0], sizes = [2, 128], strides = [1, 1]} : vector<2x384xf32> to vector<2x128xf32>
    %49 = arith.addf %47, %48 : vector<2x128xf32>
    %50 = arith.negf %49 : vector<2x128xf32>
    %51 = math.exp %50 : vector<2x128xf32>
    %cst_20 = arith.constant 1.000000e+00 : f32
    %52 = vector.broadcast %cst_20 : f32 to vector<2x128xf32>
    %53 = arith.addf %52, %51 : vector<2x128xf32>
    %54 = arith.divf %52, %53 : vector<2x128xf32>
    %55 = vector.extract_strided_slice %45 {offsets = [0, 128], sizes = [2, 128], strides = [1, 1]} : vector<2x384xf32> to vector<2x128xf32>
    %56 = vector.extract_strided_slice %46 {offsets = [0, 128], sizes = [2, 128], strides = [1, 1]} : vector<2x384xf32> to vector<2x128xf32>
    %57 = arith.addf %55, %56 : vector<2x128xf32>
    %58 = arith.negf %57 : vector<2x128xf32>
    %59 = math.exp %58 : vector<2x128xf32>
    %cst_21 = arith.constant 1.000000e+00 : f32
    %60 = vector.broadcast %cst_21 : f32 to vector<2x128xf32>
    %61 = arith.addf %60, %59 : vector<2x128xf32>
    %62 = arith.divf %60, %61 : vector<2x128xf32>
    %63 = vector.extract_strided_slice %45 {offsets = [0, 256], sizes = [2, 128], strides = [1, 1]} : vector<2x384xf32> to vector<2x128xf32>
    %64 = vector.extract_strided_slice %46 {offsets = [0, 256], sizes = [2, 128], strides = [1, 1]} : vector<2x384xf32> to vector<2x128xf32>
    %65 = vector.broadcast %6 : vector<1x128xf32> to vector<2x128xf32>
    %66 = arith.addf %64, %65 : vector<2x128xf32>
    %67 = arith.mulf %54, %66 : vector<2x128xf32>
    %68 = arith.addf %63, %67 : vector<2x128xf32>
    %69 = math.tanh %68 : vector<2x128xf32>
    %cst_22 = arith.constant 1.000000e+00 : f32
    %70 = vector.broadcast %cst_22 : f32 to vector<2x128xf32>
    %71 = arith.subf %70, %62 : vector<2x128xf32>
    %72 = arith.mulf %71, %69 : vector<2x128xf32>
    %73 = arith.mulf %62, %41 : vector<2x128xf32>
    %74 = arith.addf %72, %73 : vector<2x128xf32>
    %c1 = arith.constant 1 : index
    %c0_23 = arith.constant 0 : index
    %c0_24 = arith.constant 0 : index
    %75 = vector.load %arg7[%c1, %c0_23, %c0_24] : memref<8x2x128xf32, #tpu.memory_space<vmem>>, vector<1x2x128xf32>
    %76 = vector.shape_cast %75 : vector<1x2x128xf32> to vector<2x128xf32>
    %77 = vector.shape_cast %74 : vector<2x128xf32> to vector<1x2x128xf32>
    tpu.vector_store %arg7[%c1, %c0_23, %c0_24], %77 {strides = array<i32>} : memref<8x2x128xf32, #tpu.memory_space<vmem>>, vector<1x2x128xf32>,
    %78 = vector.extract_strided_slice %10 {offsets = [4, 0], sizes = [2, 384], strides = [1, 1]} : vector<16x384xf32> to vector<2x384xf32>
    %cst_25 = arith.constant dense<0.000000e+00> : vector<2x384xf32>
    %79 = tpu.matmul %74, %4, %cst_25 {dimension_numbers = #tpu.dot_dimension_numbers<[1], [0], [0], [1], [0, 0, 1, 1], [], []>} : vector<2x128xf32>, vector<128x384xf32>, vector<2x384xf32> -> vector<2x384xf32>
    %80 = vector.extract_strided_slice %78 {offsets = [0, 0], sizes = [2, 128], strides = [1, 1]} : vector<2x384xf32> to vector<2x128xf32>
    %81 = vector.extract_strided_slice %79 {offsets = [0, 0], sizes = [2, 128], strides = [1, 1]} : vector<2x384xf32> to vector<2x128xf32>
    %82 = arith.addf %80, %81 : vector<2x128xf32>
    %83 = arith.negf %82 : vector<2x128xf32>
    %84 = math.exp %83 : vector<2x128xf32>
    %cst_26 = arith.constant 1.000000e+00 : f32
    %85 = vector.broadcast %cst_26 : f32 to vector<2x128xf32>
    %86 = arith.addf %85, %84 : vector<2x128xf32>
    %87 = arith.divf %85, %86 : vector<2x128xf32>
    %88 = vector.extract_strided_slice %78 {offsets = [0, 128], sizes = [2, 128], strides = [1, 1]} : vector<2x384xf32> to vector<2x128xf32>
    %89 = vector.extract_strided_slice %79 {offsets = [0, 128], sizes = [2, 128], strides = [1, 1]} : vector<2x384xf32> to vector<2x128xf32>
    %90 = arith.addf %88, %89 : vector<2x128xf32>
    %91 = arith.negf %90 : vector<2x128xf32>
    %92 = math.exp %91 : vector<2x128xf32>
    %cst_27 = arith.constant 1.000000e+00 : f32
    %93 = vector.broadcast %cst_27 : f32 to vector<2x128xf32>
    %94 = arith.addf %93, %92 : vector<2x128xf32>
    %95 = arith.divf %93, %94 : vector<2x128xf32>
    %96 = vector.extract_strided_slice %78 {offsets = [0, 256], sizes = [2, 128], strides = [1, 1]} : vector<2x384xf32> to vector<2x128xf32>
    %97 = vector.extract_strided_slice %79 {offsets = [0, 256], sizes = [2, 128], strides = [1, 1]} : vector<2x384xf32> to vector<2x128xf32>
    %98 = vector.broadcast %6 : vector<1x128xf32> to vector<2x128xf32>
    %99 = arith.addf %97, %98 : vector<2x128xf32>
    %100 = arith.mulf %87, %99 : vector<2x128xf32>
    %101 = arith.addf %96, %100 : vector<2x128xf32>
    %102 = math.tanh %101 : vector<2x128xf32>
    %cst_28 = arith.constant 1.000000e+00 : f32
    %103 = vector.broadcast %cst_28 : f32 to vector<2x128xf32>
    %104 = arith.subf %103, %95 : vector<2x128xf32>
    %105 = arith.mulf %104, %102 : vector<2x128xf32>
    %106 = arith.mulf %95, %74 : vector<2x128xf32>
    %107 = arith.addf %105, %106 : vector<2x128xf32>
    %c2 = arith.constant 2 : index
    %c0_29 = arith.constant 0 : index
    %c0_30 = arith.constant 0 : index
    %108 = vector.load %arg7[%c2, %c0_29, %c0_30] : memref<8x2x128xf32, #tpu.memory_space<vmem>>, vector<1x2x128xf32>
    %109 = vector.shape_cast %108 : vector<1x2x128xf32> to vector<2x128xf32>
    %110 = vector.shape_cast %107 : vector<2x128xf32> to vector<1x2x128xf32>
    tpu.vector_store %arg7[%c2, %c0_29, %c0_30], %110 {strides = array<i32>} : memref<8x2x128xf32, #tpu.memory_space<vmem>>, vector<1x2x128xf32>,
    %111 = vector.extract_strided_slice %10 {offsets = [6, 0], sizes = [2, 384], strides = [1, 1]} : vector<16x384xf32> to vector<2x384xf32>
    %cst_31 = arith.constant dense<0.000000e+00> : vector<2x384xf32>
    %112 = tpu.matmul %107, %4, %cst_31 {dimension_numbers = #tpu.dot_dimension_numbers<[1], [0], [0], [1], [0, 0, 1, 1], [], []>} : vector<2x128xf32>, vector<128x384xf32>, vector<2x384xf32> -> vector<2x384xf32>
    %113 = vector.extract_strided_slice %111 {offsets = [0, 0], sizes = [2, 128], strides = [1, 1]} : vector<2x384xf32> to vector<2x128xf32>
    %114 = vector.extract_strided_slice %112 {offsets = [0, 0], sizes = [2, 128], strides = [1, 1]} : vector<2x384xf32> to vector<2x128xf32>
    %115 = arith.addf %113, %114 : vector<2x128xf32>
    %116 = arith.negf %115 : vector<2x128xf32>
    %117 = math.exp %116 : vector<2x128xf32>
    %cst_32 = arith.constant 1.000000e+00 : f32
    %118 = vector.broadcast %cst_32 : f32 to vector<2x128xf32>
    %119 = arith.addf %118, %117 : vector<2x128xf32>
    %120 = arith.divf %118, %119 : vector<2x128xf32>
    %121 = vector.extract_strided_slice %111 {offsets = [0, 128], sizes = [2, 128], strides = [1, 1]} : vector<2x384xf32> to vector<2x128xf32>
    %122 = vector.extract_strided_slice %112 {offsets = [0, 128], sizes = [2, 128], strides = [1, 1]} : vector<2x384xf32> to vector<2x128xf32>
    %123 = arith.addf %121, %122 : vector<2x128xf32>
    %124 = arith.negf %123 : vector<2x128xf32>
    %125 = math.exp %124 : vector<2x128xf32>
    %cst_33 = arith.constant 1.000000e+00 : f32
    %126 = vector.broadcast %cst_33 : f32 to vector<2x128xf32>
    %127 = arith.addf %126, %125 : vector<2x128xf32>
    %128 = arith.divf %126, %127 : vector<2x128xf32>
    %129 = vector.extract_strided_slice %111 {offsets = [0, 256], sizes = [2, 128], strides = [1, 1]} : vector<2x384xf32> to vector<2x128xf32>
    %130 = vector.extract_strided_slice %112 {offsets = [0, 256], sizes = [2, 128], strides = [1, 1]} : vector<2x384xf32> to vector<2x128xf32>
    %131 = vector.broadcast %6 : vector<1x128xf32> to vector<2x128xf32>
    %132 = arith.addf %130, %131 : vector<2x128xf32>
    %133 = arith.mulf %120, %132 : vector<2x128xf32>
    %134 = arith.addf %129, %133 : vector<2x128xf32>
    %135 = math.tanh %134 : vector<2x128xf32>
    %cst_34 = arith.constant 1.000000e+00 : f32
    %136 = vector.broadcast %cst_34 : f32 to vector<2x128xf32>
    %137 = arith.subf %136, %128 : vector<2x128xf32>
    %138 = arith.mulf %137, %135 : vector<2x128xf32>
    %139 = arith.mulf %128, %107 : vector<2x128xf32>
    %140 = arith.addf %138, %139 : vector<2x128xf32>
    %c3 = arith.constant 3 : index
    %c0_35 = arith.constant 0 : index
    %c0_36 = arith.constant 0 : index
    %141 = vector.load %arg7[%c3, %c0_35, %c0_36] : memref<8x2x128xf32, #tpu.memory_space<vmem>>, vector<1x2x128xf32>
    %142 = vector.shape_cast %141 : vector<1x2x128xf32> to vector<2x128xf32>
    %143 = vector.shape_cast %140 : vector<2x128xf32> to vector<1x2x128xf32>
    tpu.vector_store %arg7[%c3, %c0_35, %c0_36], %143 {strides = array<i32>} : memref<8x2x128xf32, #tpu.memory_space<vmem>>, vector<1x2x128xf32>,
    %144 = vector.extract_strided_slice %10 {offsets = [8, 0], sizes = [2, 384], strides = [1, 1]} : vector<16x384xf32> to vector<2x384xf32>
    %cst_37 = arith.constant dense<0.000000e+00> : vector<2x384xf32>
    %145 = tpu.matmul %140, %4, %cst_37 {dimension_numbers = #tpu.dot_dimension_numbers<[1], [0], [0], [1], [0, 0, 1, 1], [], []>} : vector<2x128xf32>, vector<128x384xf32>, vector<2x384xf32> -> vector<2x384xf32>
    %146 = vector.extract_strided_slice %144 {offsets = [0, 0], sizes = [2, 128], strides = [1, 1]} : vector<2x384xf32> to vector<2x128xf32>
    %147 = vector.extract_strided_slice %145 {offsets = [0, 0], sizes = [2, 128], strides = [1, 1]} : vector<2x384xf32> to vector<2x128xf32>
    %148 = arith.addf %146, %147 : vector<2x128xf32>
    %149 = arith.negf %148 : vector<2x128xf32>
    %150 = math.exp %149 : vector<2x128xf32>
    %cst_38 = arith.constant 1.000000e+00 : f32
    %151 = vector.broadcast %cst_38 : f32 to vector<2x128xf32>
    %152 = arith.addf %151, %150 : vector<2x128xf32>
    %153 = arith.divf %151, %152 : vector<2x128xf32>
    %154 = vector.extract_strided_slice %144 {offsets = [0, 128], sizes = [2, 128], strides = [1, 1]} : vector<2x384xf32> to vector<2x128xf32>
    %155 = vector.extract_strided_slice %145 {offsets = [0, 128], sizes = [2, 128], strides = [1, 1]} : vector<2x384xf32> to vector<2x128xf32>
    %156 = arith.addf %154, %155 : vector<2x128xf32>
    %157 = arith.negf %156 : vector<2x128xf32>
    %158 = math.exp %157 : vector<2x128xf32>
    %cst_39 = arith.constant 1.000000e+00 : f32
    %159 = vector.broadcast %cst_39 : f32 to vector<2x128xf32>
    %160 = arith.addf %159, %158 : vector<2x128xf32>
    %161 = arith.divf %159, %160 : vector<2x128xf32>
    %162 = vector.extract_strided_slice %144 {offsets = [0, 256], sizes = [2, 128], strides = [1, 1]} : vector<2x384xf32> to vector<2x128xf32>
    %163 = vector.extract_strided_slice %145 {offsets = [0, 256], sizes = [2, 128], strides = [1, 1]} : vector<2x384xf32> to vector<2x128xf32>
    %164 = vector.broadcast %6 : vector<1x128xf32> to vector<2x128xf32>
    %165 = arith.addf %163, %164 : vector<2x128xf32>
    %166 = arith.mulf %153, %165 : vector<2x128xf32>
    %167 = arith.addf %162, %166 : vector<2x128xf32>
    %168 = math.tanh %167 : vector<2x128xf32>
    %cst_40 = arith.constant 1.000000e+00 : f32
    %169 = vector.broadcast %cst_40 : f32 to vector<2x128xf32>
    %170 = arith.subf %169, %161 : vector<2x128xf32>
    %171 = arith.mulf %170, %168 : vector<2x128xf32>
    %172 = arith.mulf %161, %140 : vector<2x128xf32>
    %173 = arith.addf %171, %172 : vector<2x128xf32>
    %c4 = arith.constant 4 : index
    %c0_41 = arith.constant 0 : index
    %c0_42 = arith.constant 0 : index
    %174 = vector.load %arg7[%c4, %c0_41, %c0_42] : memref<8x2x128xf32, #tpu.memory_space<vmem>>, vector<1x2x128xf32>
    %175 = vector.shape_cast %174 : vector<1x2x128xf32> to vector<2x128xf32>
    %176 = vector.shape_cast %173 : vector<2x128xf32> to vector<1x2x128xf32>
    tpu.vector_store %arg7[%c4, %c0_41, %c0_42], %176 {strides = array<i32>} : memref<8x2x128xf32, #tpu.memory_space<vmem>>, vector<1x2x128xf32>,
    %177 = vector.extract_strided_slice %10 {offsets = [10, 0], sizes = [2, 384], strides = [1, 1]} : vector<16x384xf32> to vector<2x384xf32>
    %cst_43 = arith.constant dense<0.000000e+00> : vector<2x384xf32>
    %178 = tpu.matmul %173, %4, %cst_43 {dimension_numbers = #tpu.dot_dimension_numbers<[1], [0], [0], [1], [0, 0, 1, 1], [], []>} : vector<2x128xf32>, vector<128x384xf32>, vector<2x384xf32> -> vector<2x384xf32>
    %179 = vector.extract_strided_slice %177 {offsets = [0, 0], sizes = [2, 128], strides = [1, 1]} : vector<2x384xf32> to vector<2x128xf32>
    %180 = vector.extract_strided_slice %178 {offsets = [0, 0], sizes = [2, 128], strides = [1, 1]} : vector<2x384xf32> to vector<2x128xf32>
    %181 = arith.addf %179, %180 : vector<2x128xf32>
    %182 = arith.negf %181 : vector<2x128xf32>
    %183 = math.exp %182 : vector<2x128xf32>
    %cst_44 = arith.constant 1.000000e+00 : f32
    %184 = vector.broadcast %cst_44 : f32 to vector<2x128xf32>
    %185 = arith.addf %184, %183 : vector<2x128xf32>
    %186 = arith.divf %184, %185 : vector<2x128xf32>
    %187 = vector.extract_strided_slice %177 {offsets = [0, 128], sizes = [2, 128], strides = [1, 1]} : vector<2x384xf32> to vector<2x128xf32>
    %188 = vector.extract_strided_slice %178 {offsets = [0, 128], sizes = [2, 128], strides = [1, 1]} : vector<2x384xf32> to vector<2x128xf32>
    %189 = arith.addf %187, %188 : vector<2x128xf32>
    %190 = arith.negf %189 : vector<2x128xf32>
    %191 = math.exp %190 : vector<2x128xf32>
    %cst_45 = arith.constant 1.000000e+00 : f32
    %192 = vector.broadcast %cst_45 : f32 to vector<2x128xf32>
    %193 = arith.addf %192, %191 : vector<2x128xf32>
    %194 = arith.divf %192, %193 : vector<2x128xf32>
    %195 = vector.extract_strided_slice %177 {offsets = [0, 256], sizes = [2, 128], strides = [1, 1]} : vector<2x384xf32> to vector<2x128xf32>
    %196 = vector.extract_strided_slice %178 {offsets = [0, 256], sizes = [2, 128], strides = [1, 1]} : vector<2x384xf32> to vector<2x128xf32>
    %197 = vector.broadcast %6 : vector<1x128xf32> to vector<2x128xf32>
    %198 = arith.addf %196, %197 : vector<2x128xf32>
    %199 = arith.mulf %186, %198 : vector<2x128xf32>
    %200 = arith.addf %195, %199 : vector<2x128xf32>
    %201 = math.tanh %200 : vector<2x128xf32>
    %cst_46 = arith.constant 1.000000e+00 : f32
    %202 = vector.broadcast %cst_46 : f32 to vector<2x128xf32>
    %203 = arith.subf %202, %194 : vector<2x128xf32>
    %204 = arith.mulf %203, %201 : vector<2x128xf32>
    %205 = arith.mulf %194, %173 : vector<2x128xf32>
    %206 = arith.addf %204, %205 : vector<2x128xf32>
    %c5 = arith.constant 5 : index
    %c0_47 = arith.constant 0 : index
    %c0_48 = arith.constant 0 : index
    %207 = vector.load %arg7[%c5, %c0_47, %c0_48] : memref<8x2x128xf32, #tpu.memory_space<vmem>>, vector<1x2x128xf32>
    %208 = vector.shape_cast %207 : vector<1x2x128xf32> to vector<2x128xf32>
    %209 = vector.shape_cast %206 : vector<2x128xf32> to vector<1x2x128xf32>
    tpu.vector_store %arg7[%c5, %c0_47, %c0_48], %209 {strides = array<i32>} : memref<8x2x128xf32, #tpu.memory_space<vmem>>, vector<1x2x128xf32>,
    %210 = vector.extract_strided_slice %10 {offsets = [12, 0], sizes = [2, 384], strides = [1, 1]} : vector<16x384xf32> to vector<2x384xf32>
    %cst_49 = arith.constant dense<0.000000e+00> : vector<2x384xf32>
    %211 = tpu.matmul %206, %4, %cst_49 {dimension_numbers = #tpu.dot_dimension_numbers<[1], [0], [0], [1], [0, 0, 1, 1], [], []>} : vector<2x128xf32>, vector<128x384xf32>, vector<2x384xf32> -> vector<2x384xf32>
    %212 = vector.extract_strided_slice %210 {offsets = [0, 0], sizes = [2, 128], strides = [1, 1]} : vector<2x384xf32> to vector<2x128xf32>
    %213 = vector.extract_strided_slice %211 {offsets = [0, 0], sizes = [2, 128], strides = [1, 1]} : vector<2x384xf32> to vector<2x128xf32>
    %214 = arith.addf %212, %213 : vector<2x128xf32>
    %215 = arith.negf %214 : vector<2x128xf32>
    %216 = math.exp %215 : vector<2x128xf32>
    %cst_50 = arith.constant 1.000000e+00 : f32
    %217 = vector.broadcast %cst_50 : f32 to vector<2x128xf32>
    %218 = arith.addf %217, %216 : vector<2x128xf32>
    %219 = arith.divf %217, %218 : vector<2x128xf32>
    %220 = vector.extract_strided_slice %210 {offsets = [0, 128], sizes = [2, 128], strides = [1, 1]} : vector<2x384xf32> to vector<2x128xf32>
    %221 = vector.extract_strided_slice %211 {offsets = [0, 128], sizes = [2, 128], strides = [1, 1]} : vector<2x384xf32> to vector<2x128xf32>
    %222 = arith.addf %220, %221 : vector<2x128xf32>
    %223 = arith.negf %222 : vector<2x128xf32>
    %224 = math.exp %223 : vector<2x128xf32>
    %cst_51 = arith.constant 1.000000e+00 : f32
    %225 = vector.broadcast %cst_51 : f32 to vector<2x128xf32>
    %226 = arith.addf %225, %224 : vector<2x128xf32>
    %227 = arith.divf %225, %226 : vector<2x128xf32>
    %228 = vector.extract_strided_slice %210 {offsets = [0, 256], sizes = [2, 128], strides = [1, 1]} : vector<2x384xf32> to vector<2x128xf32>
    %229 = vector.extract_strided_slice %211 {offsets = [0, 256], sizes = [2, 128], strides = [1, 1]} : vector<2x384xf32> to vector<2x128xf32>
    %230 = vector.broadcast %6 : vector<1x128xf32> to vector<2x128xf32>
    %231 = arith.addf %229, %230 : vector<2x128xf32>
    %232 = arith.mulf %219, %231 : vector<2x128xf32>
    %233 = arith.addf %228, %232 : vector<2x128xf32>
    %234 = math.tanh %233 : vector<2x128xf32>
    %cst_52 = arith.constant 1.000000e+00 : f32
    %235 = vector.broadcast %cst_52 : f32 to vector<2x128xf32>
    %236 = arith.subf %235, %227 : vector<2x128xf32>
    %237 = arith.mulf %236, %234 : vector<2x128xf32>
    %238 = arith.mulf %227, %206 : vector<2x128xf32>
    %239 = arith.addf %237, %238 : vector<2x128xf32>
    %c6 = arith.constant 6 : index
    %c0_53 = arith.constant 0 : index
    %c0_54 = arith.constant 0 : index
    %240 = vector.load %arg7[%c6, %c0_53, %c0_54] : memref<8x2x128xf32, #tpu.memory_space<vmem>>, vector<1x2x128xf32>
    %241 = vector.shape_cast %240 : vector<1x2x128xf32> to vector<2x128xf32>
    %242 = vector.shape_cast %239 : vector<2x128xf32> to vector<1x2x128xf32>
    tpu.vector_store %arg7[%c6, %c0_53, %c0_54], %242 {strides = array<i32>} : memref<8x2x128xf32, #tpu.memory_space<vmem>>, vector<1x2x128xf32>,
    %243 = vector.extract_strided_slice %10 {offsets = [14, 0], sizes = [2, 384], strides = [1, 1]} : vector<16x384xf32> to vector<2x384xf32>
    %cst_55 = arith.constant dense<0.000000e+00> : vector<2x384xf32>
    %244 = tpu.matmul %239, %4, %cst_55 {dimension_numbers = #tpu.dot_dimension_numbers<[1], [0], [0], [1], [0, 0, 1, 1], [], []>} : vector<2x128xf32>, vector<128x384xf32>, vector<2x384xf32> -> vector<2x384xf32>
    %245 = vector.extract_strided_slice %243 {offsets = [0, 0], sizes = [2, 128], strides = [1, 1]} : vector<2x384xf32> to vector<2x128xf32>
    %246 = vector.extract_strided_slice %244 {offsets = [0, 0], sizes = [2, 128], strides = [1, 1]} : vector<2x384xf32> to vector<2x128xf32>
    %247 = arith.addf %245, %246 : vector<2x128xf32>
    %248 = arith.negf %247 : vector<2x128xf32>
    %249 = math.exp %248 : vector<2x128xf32>
    %cst_56 = arith.constant 1.000000e+00 : f32
    %250 = vector.broadcast %cst_56 : f32 to vector<2x128xf32>
    %251 = arith.addf %250, %249 : vector<2x128xf32>
    %252 = arith.divf %250, %251 : vector<2x128xf32>
    %253 = vector.extract_strided_slice %243 {offsets = [0, 128], sizes = [2, 128], strides = [1, 1]} : vector<2x384xf32> to vector<2x128xf32>
    %254 = vector.extract_strided_slice %244 {offsets = [0, 128], sizes = [2, 128], strides = [1, 1]} : vector<2x384xf32> to vector<2x128xf32>
    %255 = arith.addf %253, %254 : vector<2x128xf32>
    %256 = arith.negf %255 : vector<2x128xf32>
    %257 = math.exp %256 : vector<2x128xf32>
    %cst_57 = arith.constant 1.000000e+00 : f32
    %258 = vector.broadcast %cst_57 : f32 to vector<2x128xf32>
    %259 = arith.addf %258, %257 : vector<2x128xf32>
    %260 = arith.divf %258, %259 : vector<2x128xf32>
    %261 = vector.extract_strided_slice %243 {offsets = [0, 256], sizes = [2, 128], strides = [1, 1]} : vector<2x384xf32> to vector<2x128xf32>
    %262 = vector.extract_strided_slice %244 {offsets = [0, 256], sizes = [2, 128], strides = [1, 1]} : vector<2x384xf32> to vector<2x128xf32>
    %263 = vector.broadcast %6 : vector<1x128xf32> to vector<2x128xf32>
    %264 = arith.addf %262, %263 : vector<2x128xf32>
    %265 = arith.mulf %252, %264 : vector<2x128xf32>
    %266 = arith.addf %261, %265 : vector<2x128xf32>
    %267 = math.tanh %266 : vector<2x128xf32>
    %cst_58 = arith.constant 1.000000e+00 : f32
    %268 = vector.broadcast %cst_58 : f32 to vector<2x128xf32>
    %269 = arith.subf %268, %260 : vector<2x128xf32>
    %270 = arith.mulf %269, %267 : vector<2x128xf32>
    %271 = arith.mulf %260, %239 : vector<2x128xf32>
    %272 = arith.addf %270, %271 : vector<2x128xf32>
    %c7 = arith.constant 7 : index
    %c0_59 = arith.constant 0 : index
    %c0_60 = arith.constant 0 : index
    %273 = vector.load %arg7[%c7, %c0_59, %c0_60] : memref<8x2x128xf32, #tpu.memory_space<vmem>>, vector<1x2x128xf32>
    %274 = vector.shape_cast %273 : vector<1x2x128xf32> to vector<2x128xf32>
    %275 = vector.shape_cast %272 : vector<2x128xf32> to vector<1x2x128xf32>
    tpu.vector_store %arg7[%c7, %c0_59, %c0_60], %275 {strides = array<i32>} : memref<8x2x128xf32, #tpu.memory_space<vmem>>, vector<1x2x128xf32>,
    %c0_61 = arith.constant 0 : index
    %c0_62 = arith.constant 0 : index
    %276 = vector.load %arg8[%c0_61, %c0_62] : memref<2x128xf32, #tpu.memory_space<vmem>>, vector<2x128xf32>
    tpu.vector_store %arg8[%c0_61, %c0_62], %272 {strides = array<i32>} : memref<2x128xf32, #tpu.memory_space<vmem>>, vector<2x128xf32>,
    return
  }
  func.func @transform_0(%arg0: i32) -> (i32, i32) {
    %c0_i32 = arith.constant 0 : i32
    %c0_i32_0 = arith.constant 0 : i32
    return %arg0, %c0_i32 : i32, i32
  }
  func.func @transform_1(%arg0: i32) -> (i32, i32) {
    %c0_i32 = arith.constant 0 : i32
    %c0_i32_0 = arith.constant 0 : i32
    %c0_i32_1 = arith.constant 0 : i32
    return %c0_i32, %c0_i32_0 : i32, i32
  }
  func.func @transform_2(%arg0: i32) -> (i32, i32) {
    %c0_i32 = arith.constant 0 : i32
    %c0_i32_0 = arith.constant 0 : i32
    %c0_i32_1 = arith.constant 0 : i32
    return %c0_i32, %c0_i32_0 : i32, i32
  }
  func.func @transform_3(%arg0: i32) -> (i32, i32) {
    %c0_i32 = arith.constant 0 : i32
    %c0_i32_0 = arith.constant 0 : i32
    %c0_i32_1 = arith.constant 0 : i32
    return %c0_i32, %c0_i32_0 : i32, i32
  }
  func.func @transform_4(%arg0: i32) -> (i32, i32) {
    %c0_i32 = arith.constant 0 : i32
    %c0_i32_0 = arith.constant 0 : i32
    %c0_i32_1 = arith.constant 0 : i32
    return %c0_i32, %c0_i32_0 : i32, i32
  }
  func.func @transform_5(%arg0: i32) -> (i32, i32) {
    %c0_i32 = arith.constant 0 : i32
    %c0_i32_0 = arith.constant 0 : i32
    %c0_i32_1 = arith.constant 0 : i32
    return %c0_i32, %c0_i32_0 : i32, i32
  }
  func.func @transform_6(%arg0: i32) -> (i32, i32, i32) {
    %c0_i32 = arith.constant 0 : i32
    %c0_i32_0 = arith.constant 0 : i32
    %c0_i32_1 = arith.constant 0 : i32
    return %arg0, %c0_i32, %c0_i32_0 : i32, i32, i32
  }
}

</mosaic_0001>

<bundles_post_ra>
// kernel: tpu_custom_call.1
= control target key start
LH: loop header
LB: loop body
LE: loop exit
PB: predicated region body
PF: predicated region fallthrough
CT: control target
= control target key end

     0   :  { %11 = vsyncpa [#allocation4], 0  ;;  %s3341_s0 = inlined_call_operand.hbm [shape: f32[16,16], index: 0, kind: input, shape index: {}]   ;;  %s3342_s1 = inlined_call_operand.hbm [shape: f32[16,384], index: 1, kind: input, shape index: {}]   ;;  %s3343_s2 = inlined_call_operand.hbm [shape: f32[128,384], index: 2, kind: input, shape index: {}]   ;;  %s3344_s3 = inlined_call_operand.vmem [shape: f32[1,384], index: 3, kind: input, shape index: {}]   ;;  %s3345_s4 = inlined_call_operand.vmem [shape: f32[1,128], index: 4, kind: input, shape index: {}]   ;;  %s3346_s5 = inlined_call_operand.vmem [shape: f32[2,128], index: 5, kind: input, shape index: {}]   ;;  %s3347_s6 = inlined_call_operand.hbm [shape: f32[8,2,128], index: 6, kind: output, shape index: {}]  }
   0x1   :  { %12 = vsyncpa [#allocation7], 0 }
   0x2   :  { %13 = vsyncpa [#allocation5], 0  ;;  %s2823_s21 = smov [#allocation6]   ;;  %s2729_s25 = scalar_lea.hbm %s3342_s1, 768 }
   0x3   :  { %s31_s22 = sshll.u32 %s2823_s21, 4  ;;  %p2730_p0 = scmp.ne.s32.totalorder %s3342_s1, %s2729_s25  ;;  %s32_s22 = int_to_ptr.vmem [resolvable:$true] %s31_s22 }
   0x4   :  { %p2733_p1 = scmp.lt.u32.totalorder %s2729_s25, %s3342_s1 }
   0x6   :  { %p2735_p2 = pnand %p2733_p1, %p2730_p0 }
   0x8   :  { %2738 = shalt.err (!%p2735_p2)
}
   0x9   :  { %s2739_s30 = scalar_lea.vmem %s32_s22, 768  ;;  %p2744_p4 = scmp.lt.s32.totalorder %s32_s22, %s32_s22 }
   0xa   :  { %p2740_p3 = scmp.ne.s32.totalorder %s32_s22, %s2739_s30  ;;  %p2745_p5 = scmp.lt.s32.totalorder %s2739_s30, %s2739_s30 }
   0xc   :  { %p2746_p6 = por %p2745_p5, %p2744_p4 }
   0xe   :  { %p2747_p7 = pnand %p2746_p6, %p2740_p3 }
  0x10   :  { %2750 = shalt.err (!%p2747_p7)
}
  0x11   :  { %s2824_s7 = smov 384   ;;  %s2825_s8 = smov 24  }
  0x12   :  { %37 = dma.hbm_to_vmem [thread:$0]  %s3342_s1, 768, %s32_s22, [#allocation7], %s2824_s7, %s2824_s7, %s2825_s8  }
  0x13   :  { %s2826_s11 = smov [#allocation3]   ;;  %s2751_s15 = scalar_lea.hbm %s3341_s0, 256 }
  0x14   :  { %s19_s12 = sshll.u32 %s2826_s11, 4  ;;  %p2752_p8 = scmp.ne.s32.totalorder %s3341_s0, %s2751_s15  ;;  %s20_s12 = int_to_ptr.vmem [resolvable:$true] %s19_s12 }
  0x15   :  { %p2755_p9 = scmp.lt.u32.totalorder %s2751_s15, %s3341_s0 }
  0x17   :  { %p2757_p10 = pnand %p2755_p9, %p2752_p8 }
  0x19   :  { %2760 = shalt.err (!%p2757_p10)
}
  0x1a   :  { %s2761_s20 = scalar_lea.vmem %s20_s12, 256  ;;  %p2766_p12 = scmp.lt.s32.totalorder %s20_s12, %s20_s12 }
  0x1b   :  { %p2762_p11 = scmp.ne.s32.totalorder %s20_s12, %s2761_s20  ;;  %p2767_p13 = scmp.lt.s32.totalorder %s2761_s20, %s2761_s20 }
  0x1d   :  { %p2768_p0 = por %p2767_p13, %p2766_p12 }
  0x1f   :  { %p2769_p1 = pnand %p2768_p0, %p2762_p11 }
  0x21   :  { %2772 = shalt.err (!%p2769_p1)
}
  0x22   :  { %s2827_s1 = smov 128   ;;  %s2828_s21 = smov 8  }
  0x23   :  { %25 = dma.hbm_to_vmem [thread:$0]  %s3341_s0, 256, %s20_s12, [#allocation4], %s2827_s1, %s2827_s1, %s2828_s21  }
  0x24   :  { %s2829_s24 = smov [#allocation8]   ;;  %s2773_s28 = scalar_lea.hbm %s3343_s2, 6144 }
  0x25   :  { %s43_s25 = sshll.u32 %s2829_s24, 4  ;;  %p2774_p2 = scmp.ne.s32.totalorder %s3343_s2, %s2773_s28  ;;  %s44_s25 = int_to_ptr.vmem [resolvable:$true] %s43_s25 }
  0x26   :  { %p2777_p3 = scmp.lt.u32.totalorder %s2773_s28, %s3343_s2 }
  0x28   :  { %p2779_p4 = pnand %p2777_p3, %p2774_p2 }
  0x2a   :  { %2782 = shalt.err (!%p2779_p4)
}
  0x2b   :  { %s2783_s11 = scalar_lea.vmem %s44_s25, 6144  ;;  %p2788_p6 = scmp.lt.s32.totalorder %s44_s25, %s44_s25 }
  0x2c   :  { %p2784_p5 = scmp.ne.s32.totalorder %s44_s25, %s2783_s11  ;;  %p2789_p7 = scmp.lt.s32.totalorder %s2783_s11, %s2783_s11 }
  0x2e   :  { %p2790_p8 = por %p2789_p7, %p2788_p6 }
  0x30   :  { %p2791_p9 = pnand %p2790_p8, %p2784_p5 }
  0x32   :  { %2794 = shalt.err (!%p2791_p9)
}
  0x33   :  { %49 = dma.hbm_to_vmem [thread:$0]  %s3343_s2, 6144, %s44_s25, [#allocation7], %s2824_s7, %s2824_s7, %s2825_s8  }
  0x34   :  { %2817 = dma.done.wait [#allocation4], 256  }
  0x35   :  { %2818 = vsyncadd [#allocation4], 4294967040 }
  0x36   :  { %2819 = dma.done.wait [#allocation7], 6912  }
  0x37   :  { %2820 = vsyncadd [#allocation7], 4294960384  ;;  %v2830_v0 = vmov 0.0   ;;  %v72_v1 = vld [vmem:[#allocation6 + $0x8] sm:$0xff]  ;;  %v75_v2 = vld [vmem:[#allocation6 + $0x20] sm:$0xff]  ;;  %vm145_vm0 = vcmask 130048  }
  0x38   :  { %216 = vmatprep.mubr.f32.mxu0 %v2830_v0  ;;  %v71_v3 = vld [vmem:[#allocation6] sm:$0xff]  ;;  %v2180_v4 = vpack.c.bf16 %v75_v2, %v72_v1  ;;  %v74_v5 = vld [vmem:[#allocation6 + $0x18] sm:$0xff]  ;;  %v127_v6 = vld [vmem:[#allocation3] sm:$0xff]  ;;  %v2831_v40 = vmov 0.0|0.0   ;;  %vm2832_vm1 = vmmov 0  }
  0x39   :  { %v78_v7 = vld [vmem:[#allocation8 + $0x8] sm:$0xff]  ;;  %v2182_v8 = vpack.c.bf16 %v74_v5, %v71_v3  ;;  %v81_v9 = vld [vmem:[#allocation8 + $0x20] sm:$0xff]  ;;  %v80_v11 = vld [vmem:[#allocation8 + $0x18] sm:$0xff]  ;;  %1897 = vmatprep.mubr.msk.f32.mxu1 %vm145_vm0, %v127_v6 }
  0x3a   :  { %v77_v10 = vld [vmem:[#allocation8] sm:$0xff]  ;;  %2181 = vmatprep.subr.bf16.mxu0 %v2180_v4  ;;  %v2915_v12 = vpack.c.bf16 %v81_v9, %v78_v7  ;;  %v84_v13 = vld [vmem:[#allocation8 + $0x38] sm:$0xff]  ;;  %v87_v14 = vld [vmem:[#allocation8 + $0x50] sm:$0xff] }
  0x3b   :  { %2183 = vmatpush1.bf16.msra.mxu0 %v2182_v8  ;;  %v2917_v15 = vpack.c.bf16 %v80_v11, %v77_v10  ;;  %v2920_v16 = vpack.c.bf16 %v87_v14, %v84_v13  ;;  %v83_v17 = vld [vmem:[#allocation8 + $0x30] sm:$0xff]  ;;  %v86_v18 = vld [vmem:[#allocation8 + $0x48] sm:$0xff]  ;;  %v93_v20 = vld [vmem:[#allocation8 + $0x80] sm:$0xff] }
  0x3c   :  { %2189 = vmatprep.subr.bf16.mxu0 %v2915_v12  ;;  %v90_v19 = vld [vmem:[#allocation8 + $0x68] sm:$0xff]  ;;  %v2924_v21 = vpack.c.bf16 %v86_v18, %v83_v17  ;;  %v89_v22 = vld [vmem:[#allocation8 + $0x60] sm:$0xff]  ;;  %v92_v24 = vld [vmem:[#allocation8 + $0x78] sm:$0xff] }
  0x3d   :  { %v2928_v23 = vpack.c.bf16 %v93_v20, %v90_v19  ;;  %v73_v25 = vld [vmem:[#allocation6 + $0x10] sm:$0xff]  ;;  %v76_v26 = vld [vmem:[#allocation6 + $0x28] sm:$0xff]  ;;  %v99_v28 = vld [vmem:[#allocation8 + $0xb0] sm:$0xff]  ;;  %v2931_v31 = vpack.c.bf16 %v92_v24, %v89_v22 }
  0x3e   :  { %1732 = vmatmul.mubr.msk.f32.vlgmr.msra.gmra.mrb[0].mxu0 %vm145_vm0, %v127_v6  ;;  %v96_v27 = vld [vmem:[#allocation8 + $0x98] sm:$0xff]  ;;  %v2184_v29 = vpack.c.bf16 %v76_v26, %v73_v25  ;;  %v128_v30 = vld [vmem:[#allocation3 + $0x8] sm:$0xff]  ;;  %v95_v32 = vld [vmem:[#allocation8 + $0x90] sm:$0xff] }
  0x3f   :  { %2191 = vmatpush1.bf16.msra.mxu0 %v2917_v15  ;;  %222 = vmatprep.mubr.f32.mxu0 %v2830_v0  ;;  %v79_v33 = vld [vmem:[#allocation8 + $0x10] sm:$0xff]  ;;  %v82_v34 = vld [vmem:[#allocation8 + $0x28] sm:$0xff]  ;;  %v2934_v35 = vpack.c.bf16 %v99_v28, %v96_v27  ;;  %v105_v38 = vld [vmem:[#allocation8 + $0xe0] sm:$0xff] }
  0x40   :  { %2193 = vmatprep.subr.bf16.mxu0 %v2920_v16  ;;  %2185 = vmatprep.subr.bf16.mxu1 %v2184_v29  ;;  %v98_v36 = vld [vmem:[#allocation8 + $0xa8] sm:$0xff]  ;;  %v2936_v39 = vpack.c.bf16 %v82_v34, %v79_v33  ;;  %v85_v41 = vld [vmem:[#allocation8 + $0x40] sm:$0xff]  ;;  %v88_v42 = vld [vmem:[#allocation8 + $0x58] sm:$0xff] }
  0x41   :  { %v102_v37 = vld [vmem:[#allocation8 + $0xc8] sm:$0xff]  ;;  %2187 = vmatpush3.bf16.msra.mxu1 %v2184_v29  ;;  %v69_v43 = vld [vmem:[%s3346_s5] sm:$0x3]  ;;  %v2945_v44 = vpack.c.bf16 %v98_v36, %v95_v32  ;;  %v101_v46 = vld [vmem:[#allocation8 + $0xc0] sm:$0xff]  ;;  %v2952_v49 = vpack.c.bf16 %v88_v42, %v85_v41  ;;  %v130_v29 = vlaneseq }
  0x42   :  { %2220 = vmatprep.subr.bf16.mxu1 %v2831_v40  ;;  %1733 = vmatmul.mubr.msk.f32.gmra.mrb[2].mxu0 %vm145_vm0, %v128_v30  ;;  %70 = vst [vmem:[#allocation2] sm:$0x3] %v69_v43  ;;  %v2949_v45 = vpack.c.bf16 %v105_v38, %v102_v37  ;;  %v104_v47 = vld [vmem:[#allocation8 + $0xd8] sm:$0xff]  ;;  %v111_v50 = vld [vmem:[#allocation8 + $0x110] sm:$0xff]  ;;  %v94_v52 = vld [vmem:[#allocation8 + $0x88] sm:$0xff] }
  0x43   :  { %2195 = vmatpush1.bf16.msra.mxu0 %v2924_v21  ;;  %369 = vmatprep.mubr.f32.mxu0 %v2830_v0  ;;  %v108_v48 = vld [vmem:[#allocation8 + $0xf8] sm:$0xff]  ;;  %v91_v51 = vld [vmem:[#allocation8 + $0x70] sm:$0xff]  ;;  %v2958_v53 = vpack.c.bf16 %v104_v47, %v101_v46  ;;  %v110_v56 = vld [vmem:[#allocation8 + $0x108] sm:$0xff] }
  0x44   :  { %2197 = vmatprep.subr.bf16.mxu0 %v2928_v23  ;;  %1898 = vmatmul.mubr.msk.f32.vlgmr.msra.gmra.mrb[0].mxu1 %vm145_vm0, %v128_v30  ;;  %v2961_v54 = vpack.c.bf16 %v111_v50, %v108_v48  ;;  %v107_v55 = vld [vmem:[#allocation8 + $0xf0] sm:$0xff]  ;;  %v114_v57 = vld [vmem:[#allocation8 + $0x128] sm:$0xff]  ;;  %v2964_v58 = vpack.c.bf16 %v94_v52, %v91_v51  ;;  %v117_v59 = vld [vmem:[#allocation8 + $0x140] sm:$0xff]  ;;  %v131_v30 = vshrl.u32 %v130_v29, 7 }
  0x45   :  { %2222 = vmatpush3.bf16.msra.mxu1 %v2936_v39  ;;  %1932 = vmatprep.mubr.msk.f32.mxu1 %vm2832_vm1, %v2830_v0  ;;  %v97_v60 = vld [vmem:[#allocation8 + $0xa0] sm:$0xff]  ;;  %v100_v61 = vld [vmem:[#allocation8 + $0xb8] sm:$0xff]  ;;  %v2968_v62 = vpack.c.bf16 %v110_v56, %v107_v55  ;;  %v2971_v63 = vpack.c.bf16 %v117_v59, %v114_v57  ;;  %v123_v5 = vld [vmem:[#allocation8 + $0x170] sm:$0xff] }
  0x46   :  { %2223 = vmatprep.subr.bf16.mxu1 %v2831_v40  ;;  %v113_v1 = vld [vmem:[#allocation8 + $0x120] sm:$0xff]  ;;  %v116_v2 = vld [vmem:[#allocation8 + $0x138] sm:$0xff]  ;;  %v2974_v4 = vpack.c.bf16 %v100_v61, %v97_v60  ;;  %v103_v6 = vld [vmem:[#allocation8 + $0xd0] sm:$0xff]  ;;  %v132_v34 = vsub.s32 0, %v131_v30  ;;  %v140_v36 = vsub.s32 2, %v131_v30  ;;  %v136_v38 = vsub.s32 1, %v131_v30 }
  0x47   :  { %2199 = vmatpush1.bf16.msra.mxu0 %v2931_v31  ;;  %v120_v3 = vld [vmem:[#allocation8 + $0x158] sm:$0xff]  ;;  %v106_v7 = vld [vmem:[#allocation8 + $0xe8] sm:$0xff]  ;;  %v2978_v8 = vpack.c.bf16 %v116_v2, %v113_v1  ;;  %v119_v10 = vld [vmem:[#allocation8 + $0x150] sm:$0xff] }
  0x48   :  { %2201 = vmatprep.subr.bf16.mxu0 %v2934_v35  ;;  %v2981_v9 = vpack.c.bf16 %v123_v5, %v120_v3  ;;  %v122_v11 = vld [vmem:[#allocation8 + $0x168] sm:$0xff]  ;;  %v2984_v13 = vpack.c.bf16 %v106_v7, %v103_v6  ;;  %v109_v14 = vld [vmem:[#allocation8 + $0x100] sm:$0xff]  ;;  %v112_v17 = vld [vmem:[#allocation8 + $0x118] sm:$0xff] }
  0x49   :  { %2225 = vmatpush3.bf16.msra.mxu1 %v2952_v49  ;;  %v2988_v18 = vpack.c.bf16 %v122_v11, %v119_v10  ;;  %v2992_v19 = vpack.c.bf16 %v112_v17, %v109_v14  ;;  %v115_v20 = vld [vmem:[#allocation8 + $0x130] sm:$0xff]  ;;  %v118_v22 = vld [vmem:[#allocation8 + $0x148] sm:$0xff]  ;;  %v2996_v24 = vld [vmem:[#allocation2] sm:$0x3] }
  0x4a   :  { %2226 = vmatprep.subr.bf16.mxu1 %v2831_v40  ;;  %v2999_v25 = vpack.c.bf16 %v118_v22, %v115_v20  ;;  %v121_v26 = vld [vmem:[#allocation8 + $0x160] sm:$0xff]  ;;  %v124_v27 = vld [vmem:[#allocation8 + $0x178] sm:$0xff] }
  0x4b   :  { %2203 = vmatpush1.bf16.msra.mxu0 %v2945_v44  ;;  %v3007_v28 = vpack.c.bf16 %v124_v27, %v121_v26  ;;  %v125_v37 = vld [vmem:[%s3344_s3] sm:$0x7] }
  0x4c   :  { %2205 = vmatprep.subr.bf16.mxu0 %v2949_v45  ;;  %v133_v41 = vrot.slane %v125_v37, %v132_v34  ;;  %v141_v42 = vrot.slane %v125_v37, %v140_v36  ;;  %v137_v43 = vrot.slane %v125_v37, %v136_v38  ;;  %v3064_v14 = vld [vmem:[%s3345_s4] ss:$0 sm:$0xff]  ;;  %s2833_s4 = smov [#allocation9]  }
  0x4d   :  { %2228 = vmatpush3.bf16.msra.mxu1 %v2964_v58  ;;  %s1719_s14 = sshll.u32 %s2833_s4, 4  ;;  %s1720_s14 = int_to_ptr.vmem [resolvable:$true] %s1719_s14 }
  0x4e   :  { %2229 = vmatprep.subr.bf16.mxu1 %v2831_v40  ;;  %s2795_s15 = scalar_lea.vmem %s1720_s14, 256  ;;  %p2800_p11 = scmp.lt.s32.totalorder %s1720_s14, %s1720_s14 }
  0x4f   :  { %2207 = vmatpush1.bf16.msra.mxu0 %v2958_v53  ;;  %p2796_p10 = scmp.ne.s32.totalorder %s1720_s14, %s2795_s15  ;;  %p2801_p12 = scmp.lt.s32.totalorder %s2795_s15, %s2795_s15 }
  0x50   :  { %2209 = vmatprep.subr.bf16.mxu0 %v2961_v54 }
  0x51   :  { %2231 = vmatpush3.bf16.msra.mxu1 %v2974_v4  ;;  %p2802_p13 = por %p2801_p12, %p2800_p11 }
  0x52   :  { %2232 = vmatprep.subr.bf16.mxu1 %v2831_v40 }
  0x53   :  { %2211 = vmatpush1.bf16.msra.mxu0 %v2968_v62  ;;  %p2803_p0 = pnand %p2802_p13, %p2796_p10 }
  0x54   :  { %2213 = vmatprep.subr.bf16.mxu0 %v2971_v63 }
  0x55   :  { %2234 = vmatpush3.bf16.msra.mxu1 %v2984_v13 }
  0x56   :  { %2235 = vmatprep.subr.bf16.mxu1 %v2831_v40 }
  0x57   :  { %2215 = vmatpush1.bf16.msra.mxu0 %v2978_v8 }
  0x58   :  { %2217 = vmatprep.subr.bf16.mxu0 %v2981_v9 }
  0x59   :  { %2237 = vmatpush3.bf16.msra.mxu1 %v2992_v19 }
  0x5a   :  { %2238 = vmatprep.subr.bf16.mxu1 %v2831_v40 }
  0x5b   :  { %2219 = vmatpush1.bf16.msra.mxu0 %v2988_v18 }
  0x5c   :  { %2245 = vmatprep.subr.bf16.mxu0 %v2915_v12 }
  0x5d   :  { %2240 = vmatpush3.bf16.msra.mxu1 %v2999_v25 }
  0x5e   :  { %370 = vmatmul.mubr.f32.vlgmr.msra.gmra.mrb[4].mxu0 %v2996_v24  ;;  %2241 = vmatprep.subr.bf16.mxu1 %v2831_v40 }
  0x5f   :  { %2247 = vmatpush1.bf16.msra.mxu0 %v2917_v15  ;;  %539 = vmatprep.mubr.f32.mxu0 %v2830_v0 }
  0x60   :  { %2249 = vmatprep.subr.bf16.mxu0 %v2920_v16 }
  0x61   :  { %2243 = vmatpush3.bf16.msra.mxu1 %v3007_v28 }
  0x62   :  { %2276 = vmatprep.subr.bf16.mxu1 %v2831_v40 }
  0x63   :  { %2251 = vmatpush1.bf16.msra.mxu0 %v2924_v21 }
  0x64   :  { %2253 = vmatprep.subr.bf16.mxu0 %v2928_v23  ;;  %1933 = vmatmul.mubr.f32.vlgmr.msra.gmra.mrb[2].mxu1 %v2996_v24 }
  0x65   :  { %2278 = vmatpush3.bf16.msra.mxu1 %v2936_v39  ;;  %1967 = vmatprep.mubr.msk.f32.mxu1 %vm2832_vm1, %v2830_v0 }
  0x66   :  { %2279 = vmatprep.subr.bf16.mxu1 %v2831_v40 }
  0x67   :  { %2255 = vmatpush1.bf16.msra.mxu0 %v2931_v31 }
  0x68   :  { %2257 = vmatprep.subr.bf16.mxu0 %v2934_v35 }
  0x69   :  { %2281 = vmatpush3.bf16.msra.mxu1 %v2952_v49 }
  0x6a   :  { %2282 = vmatprep.subr.bf16.mxu1 %v2831_v40 }
  0x6b   :  { %2259 = vmatpush1.bf16.msra.mxu0 %v2945_v44 }
  0x6c   :  { %2261 = vmatprep.subr.bf16.mxu0 %v2949_v45 }
  0x6d   :  { %2284 = vmatpush3.bf16.msra.mxu1 %v2964_v58 }
  0x6e   :  { %2285 = vmatprep.subr.bf16.mxu1 %v2831_v40 }
  0x6f   :  { %2263 = vmatpush1.bf16.msra.mxu0 %v2958_v53 }
  0x70   :  { %2265 = vmatprep.subr.bf16.mxu0 %v2961_v54 }
  0x71   :  { %2287 = vmatpush3.bf16.msra.mxu1 %v2974_v4 }
  0x72   :  { %2288 = vmatprep.subr.bf16.mxu1 %v2831_v40 }
  0x73   :  { %2267 = vmatpush1.bf16.msra.mxu0 %v2968_v62 }
  0x74   :  { %2269 = vmatprep.subr.bf16.mxu0 %v2971_v63 }
  0x75   :  { %2290 = vmatpush3.bf16.msra.mxu1 %v2984_v13 }
  0x76   :  { %2291 = vmatprep.subr.bf16.mxu1 %v2831_v40 }
  0x77   :  { %2271 = vmatpush1.bf16.msra.mxu0 %v2978_v8 }
  0x78   :  { %2273 = vmatprep.subr.bf16.mxu0 %v2981_v9 }
  0x79   :  { %2293 = vmatpush3.bf16.msra.mxu1 %v2992_v19 }
  0x7a   :  { %2294 = vmatprep.subr.bf16.mxu1 %v2831_v40 }
  0x7b   :  { %2275 = vmatpush1.bf16.msra.mxu0 %v2988_v18 }
  0x7c   :  { %2301 = vmatprep.subr.bf16.mxu0 %v2915_v12 }
  0x7d   :  { %2296 = vmatpush3.bf16.msra.mxu1 %v2999_v25 }
  0x7e   :  { %2297 = vmatprep.subr.bf16.mxu1 %v2831_v40 }
  0x81   :  { %2299 = vmatpush3.bf16.msra.mxu1 %v3007_v28 }
  0x82   :  { %2332 = vmatprep.subr.bf16.mxu1 %v2831_v40 }
 0x111   :  { %v218_v32 = vpop.f32.mrb[0].mxu0 }
 0x112   :  { %v220_v33 = vpop.f32.mrb[1].mxu0  ;;  %v3055_v56 = vadd.f32 %v218_v32, %v133_v41 }
 0x113   :  { %v3058_v61 = vadd.f32 %v220_v33, %v137_v43 }
 0x115   :  { %v224_v46 = vpop.f32.mrb[2].mxu0 }
 0x116   :  { %v3049_v47 = vadd.f32 %v224_v46, %v133_v41  ;;  %v226_v48 = vpop.f32.mrb[3].mxu0 }
 0x117   :  { %v1899_v50 = vpop.f32.mrb[0].mxu1  ;;  %v3051_v51 = vadd.f32 %v226_v48, %v137_v43 }
 0x118   :  { %v3053_v52 = vadd.f32 %v1899_v50, %v141_v42  ;;  %v295_v55 = vpop.f32.mrb[1].mxu1 }
 0x119   :  { %v3067_v26 = vadd.f32 %v295_v55, %v141_v42 }
 0x131   :  { %v371_v57 = vpop.f32.mrb[4].mxu0 }
 0x132   :  { %v446_v59 = vadd.f32 %v371_v57, %v3055_v56  ;;  %v373_v60 = vpop.f32.mrb[5].mxu0 }
 0x133   :  { %v453_v2 = vadd.f32 %v373_v60, %v3058_v61 }
 0x134   :  { %v1736_v1 = vmul.f32 -1.442695, %v446_v59 }
 0x135   :  { %v1737_v3 = vmul.f32 -1.442695, %v453_v2 }
 0x136   :  { %2649 = vpow2.f32 %v1736_v1 }
 0x137   :  { %v442_v5 = vpop.f32.mrb[2].mxu1  ;;  %2651 = vpow2.f32 %v1737_v3 }
 0x138   :  { %v1934_v6 = vpop.f32.mrb[3].mxu1  ;;  %v466_v20 = vadd.f32 %v3064_v14, %v442_v5 }
 0x140   :  { %v2650_v7 = vpop.eup %2649 }
 0x141   :  { %v450_v10 = vadd.f32 1.0, %v2650_v7  ;;  %v2652_v11 = vpop.eup %2651 }
 0x142   :  { %v457_v17 = vadd.f32 1.0, %v2652_v11 }
 0x143   :  { %2653 = vrcp.f32 %v450_v10 }
 0x144   :  { %2655 = vrcp.f32 %v457_v17 }
 0x14d   :  { %v2654_v22 = vpop.eup %2653 }
 0x14e   :  { %v467_v27 = vmul.f32 %v2654_v22, %v466_v20  ;;  %v2656_v30 = vpop.eup %2655 }
 0x14f   :  { %v470_v32 = vsub.f32 1.0, %v2656_v30  ;;  %v472_v36 = vmul.f32 %v2656_v30, %v2996_v24 }
 0x150   :  { %v468_v29 = vadd.f32 %v467_v27, %v3067_v26 }
 0x152   :  { %2657 = vtanh.f32 %v468_v29 }
 0x15c   :  { %v2658_v33 = vpop.eup %2657 }
 0x15d   :  { %v471_v34 = vmul.f32 %v2658_v33, %v470_v32 }
 0x15f   :  { %v3071_v37 = vadd.f32 %v472_v36, %v471_v34 }
 0x161   :  { %474 = vst [vmem:[#allocation9] sm:$0x3] %v3071_v37  ;;  %540 = vmatmul.mubr.f32.vlgmr.msra.gmra.mrb[6].mxu0 %v3071_v37  ;;  %1968 = vmatmul.mubr.f32.vlgmr.msra.gmra.mrb[4].mxu1 %v3071_v37  ;;  %v646_v7 = vrot.slane %v3071_v37, 6 }
 0x162   :  { %2303 = vmatpush1.bf16.msra.mxu0 %v2917_v15  ;;  %2334 = vmatpush3.bf16.msra.mxu1 %v2936_v39 }
 0x163   :  { %2305 = vmatprep.subr.bf16.mxu0 %v2920_v16  ;;  %2335 = vmatprep.subr.bf16.mxu1 %v2831_v40 }
 0x164   :  { %719 = vmatprep.mubr.f32.mxu0 %v2830_v0  ;;  %2002 = vmatprep.mubr.msk.f32.mxu1 %vm2832_vm1, %v2830_v0 }
 0x166   :  { %2307 = vmatpush1.bf16.msra.mxu0 %v2924_v21  ;;  %2337 = vmatpush3.bf16.msra.mxu1 %v2952_v49 }
 0x167   :  { %2309 = vmatprep.subr.bf16.mxu0 %v2928_v23  ;;  %2338 = vmatprep.subr.bf16.mxu1 %v2831_v40 }
 0x16a   :  { %2311 = vmatpush1.bf16.msra.mxu0 %v2931_v31  ;;  %2340 = vmatpush3.bf16.msra.mxu1 %v2964_v58 }
 0x16b   :  { %2313 = vmatprep.subr.bf16.mxu0 %v2934_v35  ;;  %2341 = vmatprep.subr.bf16.mxu1 %v2831_v40 }
 0x16e   :  { %2315 = vmatpush1.bf16.msra.mxu0 %v2945_v44  ;;  %2343 = vmatpush3.bf16.msra.mxu1 %v2974_v4 }
 0x16f   :  { %2317 = vmatprep.subr.bf16.mxu0 %v2949_v45  ;;  %2344 = vmatprep.subr.bf16.mxu1 %v2831_v40 }
 0x172   :  { %2319 = vmatpush1.bf16.msra.mxu0 %v2958_v53  ;;  %2346 = vmatpush3.bf16.msra.mxu1 %v2984_v13 }
 0x173   :  { %2321 = vmatprep.subr.bf16.mxu0 %v2961_v54  ;;  %2347 = vmatprep.subr.bf16.mxu1 %v2831_v40 }
 0x176   :  { %2323 = vmatpush1.bf16.msra.mxu0 %v2968_v62  ;;  %2349 = vmatpush3.bf16.msra.mxu1 %v2992_v19 }
 0x177   :  { %2325 = vmatprep.subr.bf16.mxu0 %v2971_v63  ;;  %2350 = vmatprep.subr.bf16.mxu1 %v2831_v40 }
 0x17a   :  { %2327 = vmatpush1.bf16.msra.mxu0 %v2978_v8  ;;  %2352 = vmatpush3.bf16.msra.mxu1 %v2999_v25 }
 0x17b   :  { %2329 = vmatprep.subr.bf16.mxu0 %v2981_v9  ;;  %2353 = vmatprep.subr.bf16.mxu1 %v2831_v40 }
 0x17e   :  { %2331 = vmatpush1.bf16.msra.mxu0 %v2988_v18  ;;  %2355 = vmatpush3.bf16.msra.mxu1 %v3007_v28 }
 0x17f   :  { %2357 = vmatprep.subr.bf16.mxu0 %v2915_v12  ;;  %2388 = vmatprep.subr.bf16.mxu1 %v2831_v40 }
 0x234   :  { %v541_v24 = vpop.f32.mrb[6].mxu0  ;;  %v612_v38 = vpop.f32.mrb[4].mxu1 }
 0x235   :  { %v617_v41 = vrot.slane %v541_v24, 6  ;;  %v543_v42 = vpop.f32.mrb[7].mxu0  ;;  %v1969_v43 = vpop.f32.mrb[5].mxu1  ;;  %v636_v3 = vadd.f32 %v3064_v14, %v612_v38 }
 0x236   :  { %v627_v46 = vrot.slane %v543_v42, 6 }
 0x237   :  { %v619_v48 = vadd.f32 %v617_v41, %v3055_v56  ;;  %v638_v5 = vrot.slane %v636_v3, 6 }
 0x238   :  { %v629_v50 = vadd.f32 %v627_v46, %v3058_v61 }
 0x239   :  { %v1739_v55 = vmul.f32 -1.442695, %v619_v48 }
 0x23a   :  { %v1740_v57 = vmul.f32 -1.442695, %v629_v50 }
 0x23b   :  { %2659 = vpow2.f32 %v1739_v55 }
 0x23c   :  { %2661 = vpow2.f32 %v1740_v57 }
 0x245   :  { %v2660_v59 = vpop.eup %2659 }
 0x246   :  { %v2662_v60 = vpop.eup %2661  ;;  %v623_v1 = vadd.f32 1.0, %v2660_v59 }
 0x247   :  { %v633_v2 = vadd.f32 1.0, %v2662_v60 }
 0x248   :  { %2663 = vrcp.f32 %v623_v1 }
 0x249   :  { %2665 = vrcp.f32 %v633_v2 }
 0x252   :  { %v2664_v6 = vpop.eup %2663 }
 0x253   :  { %v2666_v10 = vpop.eup %2665  ;;  %v640_v11 = vmul.f32 %v2664_v6, %v638_v5 }
 0x254   :  { %v648_v17 = vmul.f32 %v2666_v10, %v646_v7  ;;  %v643_v22 = vsub.f32 1.0, %v2666_v10 }
 0x255   :  { %v641_v20 = vadd.f32 %v640_v11, %v3067_v26 }
 0x257   :  { %2667 = vtanh.f32 %v641_v20 }
 0x261   :  { %v2668_v27 = vpop.eup %2667 }
 0x262   :  { %v644_v29 = vmul.f32 %v2668_v27, %v643_v22 }
 0x264   :  { %v3116_v30 = vadd.f32 %v648_v17, %v644_v29 }
 0x266   :  { %651 = vst [vmem:[#allocation9] sm:$0xc] %v3116_v30  ;;  %v653_v32 = vrot.slane %v3116_v30, 2  ;;  %v825_v2 = vrot.slane %v3116_v30, 6 }
 0x268   :  { %720 = vmatmul.mubr.f32.vlgmr.msra.gmra.mrb[8].mxu0 %v653_v32  ;;  %2003 = vmatmul.mubr.f32.vlgmr.msra.gmra.mrb[6].mxu1 %v653_v32 }
 0x269   :  { %2359 = vmatpush1.bf16.msra.mxu0 %v2917_v15  ;;  %2390 = vmatpush3.bf16.msra.mxu1 %v2936_v39 }
 0x26a   :  { %2361 = vmatprep.subr.bf16.mxu0 %v2920_v16  ;;  %2391 = vmatprep.subr.bf16.mxu1 %v2831_v40 }
 0x26b   :  { %898 = vmatprep.mubr.f32.mxu0 %v2830_v0  ;;  %2037 = vmatprep.mubr.msk.f32.mxu1 %vm2832_vm1, %v2830_v0 }
 0x26d   :  { %2363 = vmatpush1.bf16.msra.mxu0 %v2924_v21  ;;  %2393 = vmatpush3.bf16.msra.mxu1 %v2952_v49 }
 0x26e   :  { %2365 = vmatprep.subr.bf16.mxu0 %v2928_v23  ;;  %2394 = vmatprep.subr.bf16.mxu1 %v2831_v40 }
 0x271   :  { %2367 = vmatpush1.bf16.msra.mxu0 %v2931_v31  ;;  %2396 = vmatpush3.bf16.msra.mxu1 %v2964_v58 }
 0x272   :  { %2369 = vmatprep.subr.bf16.mxu0 %v2934_v35  ;;  %2397 = vmatprep.subr.bf16.mxu1 %v2831_v40 }
 0x275   :  { %2371 = vmatpush1.bf16.msra.mxu0 %v2945_v44  ;;  %2399 = vmatpush3.bf16.msra.mxu1 %v2974_v4 }
 0x276   :  { %2373 = vmatprep.subr.bf16.mxu0 %v2949_v45  ;;  %2400 = vmatprep.subr.bf16.mxu1 %v2831_v40 }
 0x279   :  { %2375 = vmatpush1.bf16.msra.mxu0 %v2958_v53  ;;  %2402 = vmatpush3.bf16.msra.mxu1 %v2984_v13 }
 0x27a   :  { %2377 = vmatprep.subr.bf16.mxu0 %v2961_v54  ;;  %2403 = vmatprep.subr.bf16.mxu1 %v2831_v40 }
 0x27d   :  { %2379 = vmatpush1.bf16.msra.mxu0 %v2968_v62  ;;  %2405 = vmatpush3.bf16.msra.mxu1 %v2992_v19 }
 0x27e   :  { %2381 = vmatprep.subr.bf16.mxu0 %v2971_v63  ;;  %2406 = vmatprep.subr.bf16.mxu1 %v2831_v40 }
 0x281   :  { %2383 = vmatpush1.bf16.msra.mxu0 %v2978_v8  ;;  %2408 = vmatpush3.bf16.msra.mxu1 %v2999_v25 }
 0x282   :  { %2385 = vmatprep.subr.bf16.mxu0 %v2981_v9  ;;  %2409 = vmatprep.subr.bf16.mxu1 %v2831_v40 }
 0x285   :  { %2387 = vmatpush1.bf16.msra.mxu0 %v2988_v18  ;;  %2411 = vmatpush3.bf16.msra.mxu1 %v3007_v28 }
 0x286   :  { %2413 = vmatprep.subr.bf16.mxu0 %v2915_v12  ;;  %2444 = vmatprep.subr.bf16.mxu1 %v2831_v40 }
 0x33b   :  { %v721_v33 = vpop.f32.mrb[8].mxu0  ;;  %v792_v34 = vpop.f32.mrb[6].mxu1 }
 0x33c   :  { %v797_v36 = vrot.slane %v721_v33, 4  ;;  %v723_v37 = vpop.f32.mrb[9].mxu0  ;;  %v2004_v24 = vpop.f32.mrb[7].mxu1  ;;  %v816_v59 = vadd.f32 %v3064_v14, %v792_v34 }
 0x33d   :  { %v807_v38 = vrot.slane %v723_v37, 4 }
 0x33e   :  { %v799_v41 = vadd.f32 %v797_v36, %v3055_v56  ;;  %v818_v60 = vrot.slane %v816_v59, 4 }
 0x33f   :  { %v809_v42 = vadd.f32 %v807_v38, %v3058_v61 }
 0x340   :  { %v1741_v43 = vmul.f32 -1.442695, %v799_v41 }
 0x341   :  { %v1742_v46 = vmul.f32 -1.442695, %v809_v42 }
 0x342   :  { %2669 = vpow2.f32 %v1741_v43 }
 0x343   :  { %2671 = vpow2.f32 %v1742_v46 }
 0x34c   :  { %v2670_v48 = vpop.eup %2669 }
 0x34d   :  { %v2672_v50 = vpop.eup %2671  ;;  %v803_v55 = vadd.f32 1.0, %v2670_v48 }
 0x34e   :  { %v813_v57 = vadd.f32 1.0, %v2672_v50 }
 0x34f   :  { %2673 = vrcp.f32 %v803_v55 }
 0x350   :  { %2675 = vrcp.f32 %v813_v57 }
 0x359   :  { %v2674_v1 = vpop.eup %2673 }
 0x35a   :  { %v2676_v3 = vpop.eup %2675  ;;  %v820_v5 = vmul.f32 %v2674_v1, %v818_v60 }
 0x35b   :  { %v827_v6 = vmul.f32 %v2676_v3, %v825_v2  ;;  %v823_v10 = vsub.f32 1.0, %v2676_v3 }
 0x35c   :  { %v821_v7 = vadd.f32 %v820_v5, %v3067_v26 }
 0x35e   :  { %2677 = vtanh.f32 %v821_v7 }
 0x368   :  { %v2678_v11 = vpop.eup %2677 }
 0x369   :  { %v824_v17 = vmul.f32 %v2678_v11, %v823_v10 }
 0x36b   :  { %v3160_v20 = vadd.f32 %v827_v6, %v824_v17 }
 0x36d   :  { %830 = vst [vmem:[#allocation9] sm:$0x30] %v3160_v20  ;;  %v832_v22 = vrot.slane %v3160_v20, 4  ;;  %v1004_v57 = vrot.slane %v3160_v20, 6 }
 0x36f   :  { %899 = vmatmul.mubr.f32.vlgmr.msra.gmra.mrb[10].mxu0 %v832_v22  ;;  %2038 = vmatmul.mubr.f32.vlgmr.msra.gmra.mrb[8].mxu1 %v832_v22 }
 0x370   :  { %2415 = vmatpush1.bf16.msra.mxu0 %v2917_v15  ;;  %2446 = vmatpush3.bf16.msra.mxu1 %v2936_v39 }
 0x371   :  { %2417 = vmatprep.subr.bf16.mxu0 %v2920_v16  ;;  %2447 = vmatprep.subr.bf16.mxu1 %v2831_v40 }
 0x372   :  { %1077 = vmatprep.mubr.f32.mxu0 %v2830_v0  ;;  %2072 = vmatprep.mubr.msk.f32.mxu1 %vm2832_vm1, %v2830_v0 }
 0x374   :  { %2419 = vmatpush1.bf16.msra.mxu0 %v2924_v21  ;;  %2449 = vmatpush3.bf16.msra.mxu1 %v2952_v49 }
 0x375   :  { %2421 = vmatprep.subr.bf16.mxu0 %v2928_v23  ;;  %2450 = vmatprep.subr.bf16.mxu1 %v2831_v40 }
 0x378   :  { %2423 = vmatpush1.bf16.msra.mxu0 %v2931_v31  ;;  %2452 = vmatpush3.bf16.msra.mxu1 %v2964_v58 }
 0x379   :  { %2425 = vmatprep.subr.bf16.mxu0 %v2934_v35  ;;  %2453 = vmatprep.subr.bf16.mxu1 %v2831_v40 }
 0x37c   :  { %2427 = vmatpush1.bf16.msra.mxu0 %v2945_v44  ;;  %2455 = vmatpush3.bf16.msra.mxu1 %v2974_v4 }
 0x37d   :  { %2429 = vmatprep.subr.bf16.mxu0 %v2949_v45  ;;  %2456 = vmatprep.subr.bf16.mxu1 %v2831_v40 }
 0x380   :  { %2431 = vmatpush1.bf16.msra.mxu0 %v2958_v53  ;;  %2458 = vmatpush3.bf16.msra.mxu1 %v2984_v13 }
 0x381   :  { %2433 = vmatprep.subr.bf16.mxu0 %v2961_v54  ;;  %2459 = vmatprep.subr.bf16.mxu1 %v2831_v40 }
 0x384   :  { %2435 = vmatpush1.bf16.msra.mxu0 %v2968_v62  ;;  %2461 = vmatpush3.bf16.msra.mxu1 %v2992_v19 }
 0x385   :  { %2437 = vmatprep.subr.bf16.mxu0 %v2971_v63  ;;  %2462 = vmatprep.subr.bf16.mxu1 %v2831_v40 }
 0x388   :  { %2439 = vmatpush1.bf16.msra.mxu0 %v2978_v8  ;;  %2464 = vmatpush3.bf16.msra.mxu1 %v2999_v25 }
 0x389   :  { %2441 = vmatprep.subr.bf16.mxu0 %v2981_v9  ;;  %2465 = vmatprep.subr.bf16.mxu1 %v2831_v40 }
 0x38c   :  { %2443 = vmatpush1.bf16.msra.mxu0 %v2988_v18  ;;  %2467 = vmatpush3.bf16.msra.mxu1 %v3007_v28 }
 0x38d   :  { %2469 = vmatprep.subr.bf16.mxu0 %v2915_v12  ;;  %2500 = vmatprep.subr.bf16.mxu1 %v2831_v40 }
 0x442   :  { %v900_v27 = vpop.f32.mrb[10].mxu0  ;;  %v971_v29 = vpop.f32.mrb[8].mxu1 }
 0x443   :  { %v976_v30 = vrot.slane %v900_v27, 2  ;;  %v902_v32 = vpop.f32.mrb[11].mxu0  ;;  %v2039_v33 = vpop.f32.mrb[9].mxu1  ;;  %v995_v48 = vadd.f32 %v3064_v14, %v971_v29 }
 0x444   :  { %v986_v34 = vrot.slane %v902_v32, 2 }
 0x445   :  { %v978_v36 = vadd.f32 %v976_v30, %v3055_v56  ;;  %v997_v50 = vrot.slane %v995_v48, 2 }
 0x446   :  { %v988_v37 = vadd.f32 %v986_v34, %v3058_v61 }
 0x447   :  { %v1743_v24 = vmul.f32 -1.442695, %v978_v36 }
 0x448   :  { %v1744_v38 = vmul.f32 -1.442695, %v988_v37 }
 0x449   :  { %2679 = vpow2.f32 %v1743_v24 }
 0x44a   :  { %2681 = vpow2.f32 %v1744_v38 }
 0x453   :  { %v2680_v41 = vpop.eup %2679 }
 0x454   :  { %v2682_v42 = vpop.eup %2681  ;;  %v982_v43 = vadd.f32 1.0, %v2680_v41 }
 0x455   :  { %v992_v46 = vadd.f32 1.0, %v2682_v42 }
 0x456   :  { %2683 = vrcp.f32 %v982_v43 }
 0x457   :  { %2685 = vrcp.f32 %v992_v46 }
 0x460   :  { %v2684_v55 = vpop.eup %2683 }
 0x461   :  { %v2686_v59 = vpop.eup %2685  ;;  %v999_v56 = vmul.f32 %v2684_v55, %v997_v50 }
 0x462   :  { %v1006_v60 = vmul.f32 %v2686_v59, %v1004_v57  ;;  %v1002_v1 = vsub.f32 1.0, %v2686_v59 }
 0x463   :  { %v1000_v61 = vadd.f32 %v999_v56, %v3067_v26 }
 0x465   :  { %2687 = vtanh.f32 %v1000_v61 }
 0x46f   :  { %v2688_v2 = vpop.eup %2687 }
 0x470   :  { %v1003_v3 = vmul.f32 %v2688_v2, %v1002_v1 }
 0x472   :  { %v1007_v5 = vadd.f32 %v1006_v60, %v1003_v3 }
 0x474   :  { %1009 = vst [vmem:[#allocation9] sm:$0xc0] %v1007_v5  ;;  %v1011_v6 = vrot.slane %v1007_v5, 6 }
 0x476   :  { %1078 = vmatmul.mubr.f32.vlgmr.msra.gmra.mrb[12].mxu0 %v1011_v6  ;;  %2073 = vmatmul.mubr.f32.vlgmr.msra.gmra.mrb[10].mxu1 %v1011_v6 }
 0x477   :  { %2471 = vmatpush1.bf16.msra.mxu0 %v2917_v15  ;;  %2502 = vmatpush3.bf16.msra.mxu1 %v2936_v39 }
 0x478   :  { %2473 = vmatprep.subr.bf16.mxu0 %v2920_v16  ;;  %2503 = vmatprep.subr.bf16.mxu1 %v2831_v40 }
 0x479   :  { %1242 = vmatprep.mubr.f32.mxu0 %v2830_v0  ;;  %2107 = vmatprep.mubr.msk.f32.mxu1 %vm2832_vm1, %v2830_v0 }
 0x47b   :  { %2475 = vmatpush1.bf16.msra.mxu0 %v2924_v21  ;;  %2505 = vmatpush3.bf16.msra.mxu1 %v2952_v49 }
 0x47c   :  { %2477 = vmatprep.subr.bf16.mxu0 %v2928_v23  ;;  %2506 = vmatprep.subr.bf16.mxu1 %v2831_v40 }
 0x47f   :  { %2479 = vmatpush1.bf16.msra.mxu0 %v2931_v31  ;;  %2508 = vmatpush3.bf16.msra.mxu1 %v2964_v58 }
 0x480   :  { %2481 = vmatprep.subr.bf16.mxu0 %v2934_v35  ;;  %2509 = vmatprep.subr.bf16.mxu1 %v2831_v40 }
 0x483   :  { %2483 = vmatpush1.bf16.msra.mxu0 %v2945_v44  ;;  %2511 = vmatpush3.bf16.msra.mxu1 %v2974_v4 }
 0x484   :  { %2485 = vmatprep.subr.bf16.mxu0 %v2949_v45  ;;  %2512 = vmatprep.subr.bf16.mxu1 %v2831_v40 }
 0x487   :  { %2487 = vmatpush1.bf16.msra.mxu0 %v2958_v53  ;;  %2514 = vmatpush3.bf16.msra.mxu1 %v2984_v13 }
 0x488   :  { %2489 = vmatprep.subr.bf16.mxu0 %v2961_v54  ;;  %2515 = vmatprep.subr.bf16.mxu1 %v2831_v40 }
 0x48b   :  { %2491 = vmatpush1.bf16.msra.mxu0 %v2968_v62  ;;  %2517 = vmatpush3.bf16.msra.mxu1 %v2992_v19 }
 0x48c   :  { %2493 = vmatprep.subr.bf16.mxu0 %v2971_v63  ;;  %2518 = vmatprep.subr.bf16.mxu1 %v2831_v40 }
 0x48f   :  { %2495 = vmatpush1.bf16.msra.mxu0 %v2978_v8  ;;  %2520 = vmatpush3.bf16.msra.mxu1 %v2999_v25 }
 0x490   :  { %2497 = vmatprep.subr.bf16.mxu0 %v2981_v9  ;;  %2521 = vmatprep.subr.bf16.mxu1 %v2831_v40 }
 0x493   :  { %2499 = vmatpush1.bf16.msra.mxu0 %v2988_v18  ;;  %2523 = vmatpush3.bf16.msra.mxu1 %v3007_v28 }
 0x494   :  { %2525 = vmatprep.subr.bf16.mxu0 %v2915_v12  ;;  %2556 = vmatprep.subr.bf16.mxu1 %v2831_v40 }
 0x549   :  { %v1079_v26 = vpop.f32.mrb[12].mxu0  ;;  %v1150_v7 = vpop.f32.mrb[10].mxu1 }
 0x54a   :  { %v1154_v10 = vadd.f32 %v1079_v26, %v3049_v47  ;;  %v1081_v11 = vpop.f32.mrb[13].mxu0  ;;  %v2074_v17 = vpop.f32.mrb[11].mxu1  ;;  %v1168_v34 = vadd.f32 %v3064_v14, %v1150_v7 }
 0x54b   :  { %v1161_v22 = vadd.f32 %v1081_v11, %v3051_v51 }
 0x54c   :  { %v1745_v20 = vmul.f32 -1.442695, %v1154_v10 }
 0x54d   :  { %v1746_v27 = vmul.f32 -1.442695, %v1161_v22 }
 0x54e   :  { %2689 = vpow2.f32 %v1745_v20 }
 0x54f   :  { %2691 = vpow2.f32 %v1746_v27 }
 0x558   :  { %v2690_v29 = vpop.eup %2689 }
 0x559   :  { %v1158_v30 = vadd.f32 1.0, %v2690_v29  ;;  %v2692_v32 = vpop.eup %2691 }
 0x55a   :  { %v1165_v33 = vadd.f32 1.0, %v2692_v32 }
 0x55b   :  { %2693 = vrcp.f32 %v1158_v30 }
 0x55c   :  { %2695 = vrcp.f32 %v1165_v33 }
 0x565   :  { %v2694_v36 = vpop.eup %2693 }
 0x566   :  { %v1169_v37 = vmul.f32 %v2694_v36, %v1168_v34  ;;  %v2696_v38 = vpop.eup %2695 }
 0x567   :  { %v1172_v41 = vsub.f32 1.0, %v2696_v38  ;;  %v1174_v46 = vmul.f32 %v2696_v38, %v1011_v6 }
 0x568   :  { %v1170_v24 = vadd.f32 %v1169_v37, %v3053_v52 }
 0x56a   :  { %2697 = vtanh.f32 %v1170_v24 }
 0x574   :  { %v2698_v42 = vpop.eup %2697 }
 0x575   :  { %v1173_v43 = vmul.f32 %v2698_v42, %v1172_v41 }
 0x577   :  { %v3243_v48 = vadd.f32 %v1174_v46, %v1173_v43 }
 0x579   :  { %1177 = vst [vmem:[#allocation9 + $0x8] sm:$0x3] %v3243_v48  ;;  %1243 = vmatmul.mubr.f32.vlgmr.msra.gmra.mrb[14].mxu0 %v3243_v48  ;;  %2108 = vmatmul.mubr.f32.vlgmr.msra.gmra.mrb[12].mxu1 %v3243_v48  ;;  %v1349_v17 = vrot.slane %v3243_v48, 6 }
 0x57a   :  { %2527 = vmatpush1.bf16.msra.mxu0 %v2917_v15  ;;  %2558 = vmatpush3.bf16.msra.mxu1 %v2936_v39 }
 0x57b   :  { %2529 = vmatprep.subr.bf16.mxu0 %v2920_v16  ;;  %2559 = vmatprep.subr.bf16.mxu1 %v2831_v40 }
 0x57c   :  { %1422 = vmatprep.mubr.f32.mxu0 %v2830_v0  ;;  %2142 = vmatprep.mubr.msk.f32.mxu1 %vm2832_vm1, %v2830_v0 }
 0x57e   :  { %2531 = vmatpush1.bf16.msra.mxu0 %v2924_v21  ;;  %2561 = vmatpush3.bf16.msra.mxu1 %v2952_v49 }
 0x57f   :  { %2533 = vmatprep.subr.bf16.mxu0 %v2928_v23  ;;  %2562 = vmatprep.subr.bf16.mxu1 %v2831_v40 }
 0x582   :  { %2535 = vmatpush1.bf16.msra.mxu0 %v2931_v31  ;;  %2564 = vmatpush3.bf16.msra.mxu1 %v2964_v58 }
 0x583   :  { %2537 = vmatprep.subr.bf16.mxu0 %v2934_v35  ;;  %2565 = vmatprep.subr.bf16.mxu1 %v2831_v40 }
 0x586   :  { %2539 = vmatpush1.bf16.msra.mxu0 %v2945_v44  ;;  %2567 = vmatpush3.bf16.msra.mxu1 %v2974_v4 }
 0x587   :  { %2541 = vmatprep.subr.bf16.mxu0 %v2949_v45  ;;  %2568 = vmatprep.subr.bf16.mxu1 %v2831_v40 }
 0x58a   :  { %2543 = vmatpush1.bf16.msra.mxu0 %v2958_v53  ;;  %2570 = vmatpush3.bf16.msra.mxu1 %v2984_v13 }
 0x58b   :  { %2545 = vmatprep.subr.bf16.mxu0 %v2961_v54  ;;  %2571 = vmatprep.subr.bf16.mxu1 %v2831_v40 }
 0x58e   :  { %2547 = vmatpush1.bf16.msra.mxu0 %v2968_v62  ;;  %2573 = vmatpush3.bf16.msra.mxu1 %v2992_v19 }
 0x58f   :  { %2549 = vmatprep.subr.bf16.mxu0 %v2971_v63  ;;  %2574 = vmatprep.subr.bf16.mxu1 %v2831_v40 }
 0x592   :  { %2551 = vmatpush1.bf16.msra.mxu0 %v2978_v8  ;;  %2576 = vmatpush3.bf16.msra.mxu1 %v2999_v25 }
 0x593   :  { %2553 = vmatprep.subr.bf16.mxu0 %v2981_v9  ;;  %2577 = vmatprep.subr.bf16.mxu1 %v2831_v40 }
 0x596   :  { %2555 = vmatpush1.bf16.msra.mxu0 %v2988_v18  ;;  %2579 = vmatpush3.bf16.msra.mxu1 %v3007_v28 }
 0x597   :  { %2581 = vmatprep.subr.bf16.mxu0 %v2915_v12  ;;  %2612 = vmatprep.subr.bf16.mxu1 %v2831_v40 }
 0x64c   :  { %v1244_v50 = vpop.f32.mrb[14].mxu0  ;;  %v1315_v55 = vpop.f32.mrb[12].mxu1 }
 0x64d   :  { %v1320_v57 = vrot.slane %v1244_v50, 6  ;;  %v1246_v59 = vpop.f32.mrb[15].mxu0  ;;  %v2109_v56 = vpop.f32.mrb[13].mxu1  ;;  %v1339_v7 = vadd.f32 %v3064_v14, %v1315_v55 }
 0x64e   :  { %v1330_v60 = vrot.slane %v1246_v59, 6 }
 0x64f   :  { %v1322_v61 = vadd.f32 %v1320_v57, %v3049_v47  ;;  %v1341_v10 = vrot.slane %v1339_v7, 6 }
 0x650   :  { %v1332_v1 = vadd.f32 %v1330_v60, %v3051_v51 }
 0x651   :  { %v1747_v2 = vmul.f32 -1.442695, %v1322_v61 }
 0x652   :  { %v1748_v3 = vmul.f32 -1.442695, %v1332_v1 }
 0x653   :  { %2699 = vpow2.f32 %v1747_v2 }
 0x654   :  { %2701 = vpow2.f32 %v1748_v3 }
 0x65d   :  { %v2700_v5 = vpop.eup %2699 }
 0x65e   :  { %v2702_v6 = vpop.eup %2701  ;;  %v1326_v26 = vadd.f32 1.0, %v2700_v5 }
 0x65f   :  { %v1336_v12 = vadd.f32 1.0, %v2702_v6 }
 0x660   :  { %2703 = vrcp.f32 %v1326_v26 }
 0x661   :  { %2705 = vrcp.f32 %v1336_v12 }
 0x66a   :  { %v2704_v11 = vpop.eup %2703 }
 0x66b   :  { %v2706_v20 = vpop.eup %2705  ;;  %v1343_v22 = vmul.f32 %v2704_v11, %v1341_v10 }
 0x66c   :  { %v1351_v27 = vmul.f32 %v2706_v20, %v1349_v17  ;;  %v1346_v30 = vsub.f32 1.0, %v2706_v20 }
 0x66d   :  { %v1344_v29 = vadd.f32 %v1343_v22, %v3053_v52 }
 0x66f   :  { %2707 = vtanh.f32 %v1344_v29 }
 0x679   :  { %v2708_v32 = vpop.eup %2707 }
 0x67a   :  { %v1347_v33 = vmul.f32 %v2708_v32, %v1346_v30 }
 0x67c   :  { %v1352_v34 = vadd.f32 %v1351_v27, %v1347_v33 }
 0x67e   :  { %1354 = vst [vmem:[#allocation9 + $0x8] sm:$0xc] %v1352_v34  ;;  %v1356_v36 = vrot.slane %v1352_v34, 2 }
 0x680   :  { %1423 = vmatmul.mubr.f32.vlgmr.msra.gmra.mrb[16].mxu0 %v1356_v36  ;;  %2143 = vmatmul.mubr.f32.vlgmr.msra.gmra.mrb[14].mxu1 %v1356_v36 }
 0x681   :  { %2583 = vmatpush1.bf16.msra.mxu0 %v2917_v15  ;;  %2614 = vmatpush3.bf16.msra.mxu1 %v2936_v39 }
 0x682   :  { %2585 = vmatprep.subr.bf16.mxu0 %v2920_v16  ;;  %2615 = vmatprep.subr.bf16.mxu1 %v2831_v40 }
 0x683   :  { %1601 = vmatprep.mubr.f32.mxu0 %v2830_v0  ;;  %2177 = vmatprep.mubr.msk.f32.mxu1 %vm2832_vm1, %v2830_v0 }
 0x685   :  { %2587 = vmatpush1.bf16.msra.mxu0 %v2924_v21  ;;  %2617 = vmatpush3.bf16.msra.mxu1 %v2952_v49 }
 0x686   :  { %2589 = vmatprep.subr.bf16.mxu0 %v2928_v23  ;;  %2618 = vmatprep.subr.bf16.mxu1 %v2831_v40 }
 0x689   :  { %2591 = vmatpush1.bf16.msra.mxu0 %v2931_v31  ;;  %2620 = vmatpush3.bf16.msra.mxu1 %v2964_v58 }
 0x68a   :  { %2593 = vmatprep.subr.bf16.mxu0 %v2934_v35  ;;  %2621 = vmatprep.subr.bf16.mxu1 %v2831_v40 }
 0x68d   :  { %2595 = vmatpush1.bf16.msra.mxu0 %v2945_v44  ;;  %2623 = vmatpush3.bf16.msra.mxu1 %v2974_v4  ;;  %v1528_v4 = vrot.slane %v1352_v34, 6 }
 0x68e   :  { %2597 = vmatprep.subr.bf16.mxu0 %v2949_v45  ;;  %2624 = vmatprep.subr.bf16.mxu1 %v2831_v40 }
 0x691   :  { %2599 = vmatpush1.bf16.msra.mxu0 %v2958_v53  ;;  %2626 = vmatpush3.bf16.msra.mxu1 %v2984_v13 }
 0x692   :  { %2601 = vmatprep.subr.bf16.mxu0 %v2961_v54  ;;  %2627 = vmatprep.subr.bf16.mxu1 %v2831_v40 }
 0x695   :  { %2603 = vmatpush1.bf16.msra.mxu0 %v2968_v62  ;;  %2629 = vmatpush3.bf16.msra.mxu1 %v2992_v19 }
 0x696   :  { %2605 = vmatprep.subr.bf16.mxu0 %v2971_v63  ;;  %2630 = vmatprep.subr.bf16.mxu1 %v2831_v40 }
 0x699   :  { %2607 = vmatpush1.bf16.msra.mxu0 %v2978_v8  ;;  %2632 = vmatpush3.bf16.msra.mxu1 %v2999_v25 }
 0x69a   :  { %2609 = vmatprep.subr.bf16.mxu0 %v2981_v9  ;;  %2633 = vmatprep.subr.bf16.mxu1 %v2831_v40 }
 0x69d   :  { %2611 = vmatpush1.bf16.msra.mxu0 %v2988_v18  ;;  %2635 = vmatpush3.bf16.msra.mxu1 %v3007_v28 }
 0x753   :  { %v1424_v0 = vpop.f32.mrb[16].mxu0  ;;  %v1495_v15 = vpop.f32.mrb[14].mxu1 }
 0x754   :  { %v1500_v16 = vrot.slane %v1424_v0, 4  ;;  %v1426_v21 = vpop.f32.mrb[17].mxu0  ;;  %v2144_v23 = vpop.f32.mrb[15].mxu1  ;;  %v1519_v58 = vadd.f32 %v3064_v14, %v1495_v15 }
 0x755   :  { %v1510_v31 = vrot.slane %v1426_v21, 4 }
 0x756   :  { %v1502_v35 = vadd.f32 %v1500_v16, %v3049_v47  ;;  %v1521_v62 = vrot.slane %v1519_v58, 4 }
 0x757   :  { %v1512_v39 = vadd.f32 %v1510_v31, %v3051_v51 }
 0x758   :  { %v1749_v44 = vmul.f32 -1.442695, %v1502_v35 }
 0x759   :  { %v1750_v45 = vmul.f32 -1.442695, %v1512_v39 }
 0x75a   :  { %2709 = vpow2.f32 %v1749_v44 }
 0x75b   :  { %2711 = vpow2.f32 %v1750_v45 }
 0x764   :  { %v2710_v49 = vpop.eup %2709 }
 0x765   :  { %v2712_v40 = vpop.eup %2711  ;;  %v1506_v53 = vadd.f32 1.0, %v2710_v49 }
 0x766   :  { %v1516_v54 = vadd.f32 1.0, %v2712_v40 }
 0x767   :  { %2713 = vrcp.f32 %v1506_v53 }
 0x768   :  { %2715 = vrcp.f32 %v1516_v54 }
 0x771   :  { %v2714_v63 = vpop.eup %2713 }
 0x772   :  { %v2716_v8 = vpop.eup %2715  ;;  %v1523_v9 = vmul.f32 %v2714_v63, %v1521_v62 }
 0x773   :  { %v1530_v13 = vmul.f32 %v2716_v8, %v1528_v4  ;;  %v1526_v19 = vsub.f32 1.0, %v2716_v8 }
 0x774   :  { %v1524_v18 = vadd.f32 %v1523_v9, %v3053_v52 }
 0x776   :  { %2717 = vtanh.f32 %v1524_v18 }
 0x780   :  { %v2718_v25 = vpop.eup %2717 }
 0x781   :  { %v1527_v28 = vmul.f32 %v2718_v25, %v1526_v19 }
 0x783   :  { %v1531_v37 = vadd.f32 %v1530_v13, %v1527_v28 }
 0x785   :  { %1533 = vst [vmem:[#allocation9 + $0x8] sm:$0x30] %v1531_v37  ;;  %v1535_v24 = vrot.slane %v1531_v37, 4  ;;  %v1707_v6 = vrot.slane %v1531_v37, 6 }
 0x787   :  { %1602 = vmatmul.mubr.f32.vlgmr.msra.gmra.mrb[18].mxu0 %v1535_v24  ;;  %2178 = vmatmul.mubr.f32.vlgmr.msra.gmra.mrb[16].mxu1 %v1535_v24 }
 0x85a   :  { %v1603_v38 = vpop.f32.mrb[18].mxu0  ;;  %v1674_v41 = vpop.f32.mrb[16].mxu1 }
 0x85b   :  { %v1679_v42 = vrot.slane %v1603_v38, 2  ;;  %v1605_v43 = vpop.f32.mrb[19].mxu0  ;;  %v2179_v46 = vpop.f32.mrb[17].mxu1  ;;  %v1698_v2 = vadd.f32 %v3064_v14, %v1674_v41 }
 0x85c   :  { %v1689_v48 = vrot.slane %v1605_v43, 2 }
 0x85d   :  { %v1681_v50 = vadd.f32 %v1679_v42, %v3049_v47  ;;  %v1700_v3 = vrot.slane %v1698_v2, 2 }
 0x85e   :  { %v1691_v55 = vadd.f32 %v1689_v48, %v3051_v51 }
 0x85f   :  { %v1751_v57 = vmul.f32 -1.442695, %v1681_v50 }
 0x860   :  { %v1752_v59 = vmul.f32 -1.442695, %v1691_v55 }
 0x861   :  { %2719 = vpow2.f32 %v1751_v57 }
 0x862   :  { %2721 = vpow2.f32 %v1752_v59 }
 0x86b   :  { %v2720_v56 = vpop.eup %2719 }
 0x86c   :  { %v2722_v60 = vpop.eup %2721  ;;  %v1685_v61 = vadd.f32 1.0, %v2720_v56 }
 0x86d   :  { %v1695_v1 = vadd.f32 1.0, %v2722_v60 }
 0x86e   :  { %2723 = vrcp.f32 %v1685_v61 }
 0x86f   :  { %2725 = vrcp.f32 %v1695_v1 }
 0x878   :  { %v2724_v5 = vpop.eup %2723 }
 0x879   :  { %v2726_v26 = vpop.eup %2725  ;;  %v1702_v12 = vmul.f32 %v2724_v5, %v1700_v3 }
 0x87a   :  { %v1709_v47 = vmul.f32 %v2726_v26, %v1707_v6  ;;  %v1705_v7 = vsub.f32 1.0, %v2726_v26 }
 0x87b   :  { %v1703_v51 = vadd.f32 %v1702_v12, %v3053_v52 }
 0x87d   :  { %2727 = vtanh.f32 %v1703_v51 }
 0x887   :  { %v2728_v10 = vpop.eup %2727 }
 0x888   :  { %v1706_v11 = vmul.f32 %v2728_v10, %v1705_v7 }
 0x88a   :  { %v1710_v17 = vadd.f32 %v1709_v47, %v1706_v11 }
 0x88c   :  { %1712 = vst [vmem:[#allocation9 + $0x8] sm:$0xc0] %v1710_v17  ;;  %1713 = vst [vmem:[#allocation2 - $0x6] sm:$0xc0] %v1710_v17 }
 0x88d   :  { %2806 = shalt.err (!%p2803_p0)
}
 0x88e   :  { %s2807_s18 = scalar_lea.hbm %s3347_s6, 256 }
 0x88f   :  { %p2808_p1 = scmp.ne.s32.totalorder %s3347_s6, %s2807_s18  ;;  %p2811_p2 = scmp.lt.u32.totalorder %s2807_s18, %s3347_s6 }
 0x891   :  { %p2813_p3 = pnand %p2811_p2, %p2808_p1 }
 0x893   :  { %2816 = shalt.err (!%p2813_p3)
}
 0x894   :  { %s2834_s22 = smov 32   ;;  %s2835_s23 = smov 2  }
 0x895   :  { %1725 = dma.vmem_to_hbm [thread:$0]  %s1720_s14, 256, %s3347_s6, [#allocation5], %s2834_s22, %s2834_s22, %s2835_s23  }
 0x896   :  { %2821 = dma.done.wait [#allocation5], 256  }
 0x897   :  { %2822 = vsyncadd [#allocation5], 4294967040 }
 0x898   :  { %1729 = vsyncpa [#allocation4], 1 }
 0x899   :  { %1730 = vsyncpa [#allocation7], 1 }
 0x89a   :  { %1731 = vsyncpa [#allocation5], 1 }

</bundles_post_ra>
